<compile_context>
chip_gen: v6e
topology: v6e:2x2x1
jax: 0.10.0
libtpu: 0.0.40
codegen_flags: <defaults>
</compile_context>

<pallas_src>
import jax
import jax.numpy as jnp
from jax.experimental import pallas as pl
from jax.experimental.pallas import tpu as pltpu


def _round_up(x, m):
    return (x + m - 1) // m * m


def _vmem_budget():
    """Generation-aware (budget, scoped-limit) in bytes."""
    cap = 64 * 1024 * 1024                      # conservative fallback (v7x per-TC)
    try:
        info = pltpu.get_tpu_info()
        cap_attr = getattr(info, "vmem_capacity_bytes", None)
        if cap_attr:
            cap = int(cap_attr)
    except Exception:
        pass
    # ~90 MiB / ~108 MiB on 128-MiB chips (v5e/v6e); ~45 / ~54 MiB on v7x.
    return int(cap * 0.70), int(cap * 0.85)


def _choose_tiles(n, out_p, item, out_item, residual, budget):
    """Pick (tm, tk).

    tk always divides round_up(n, 128), so the contraction axis is never
    padded beyond the next multiple of 128.  Prefers >= 8 row steps (>= 4 per
    TensorCore on dual-TC chips) as long as tm stays >= 128; otherwise the
    largest row tile that fits the VMEM budget wins.
    """
    n_cols = _round_up(n, 128)
    u = n_cols // 128
    best = None
    best_stepped = None
    for tm in (1024, 512, 256, 128, 64, 32, 16):
        if tm > _round_up(n, 16) and tm != 16:
            continue                                # don't blow tiny graphs up
        fixed = (2 * tm * out_p * out_item          # output tile (double buf)
                 + tm * out_p * 4                   # f32 accumulator scratch
                 + 2 * tm * 2 * 4                   # [1/deg, snorm] row tile
                 + 2 * 8 * out_p * 4)               # packed epilogue constants
        if residual:
            fixed += 2 * tm * out_p * out_item      # residual row tile
        rem = budget - fixed
        # Cost of one 128-column chunk of the contraction (A tile + HW tile).
        per_chunk = 2 * tm * 128 * item + 2 * 128 * out_p * item
        if rem < per_chunk:
            continue
        max_chunks = rem // per_chunk
        d = 1
        for c in range(1, u + 1):                   # largest divisor of u that fits
            if u % c == 0 and c <= max_chunks:
                d = c
        tk = d * 128
        if best is None:
            best = (tm, tk)
        if best_stepped is None and tm >= 128 and _round_up(n, tm) // tm >= 8:
            best_stepped = (tm, tk)
    if best_stepped is not None:
        return best_stepped
    if best is not None:
        return best
    return 16, 128


def _make_gcn_kernel(graph_norm, batch_norm, residual, activation):
    """agg (over K tiles) -> [epilogue: mean, bias, norms, act, residual]."""

    def kernel(*refs):
        if residual:
            a_ref, hw_ref, rs_ref, c_ref, hin_ref, o_ref, acc_ref = refs
        else:
            a_ref, hw_ref, rs_ref, c_ref, o_ref, acc_ref = refs
            hin_ref = None

        k = pl.program_id(1)

        @pl.when(k == 0)
        def _():
            acc_ref[...] = jnp.zeros_like(acc_ref)

        # Sum over in-neighbors: (tm, tk) @ (tk, out_p), narrow storage dtype,
        # f32 accumulate on the MXU.
        acc_ref[...] += jnp.dot(a_ref[...], hw_ref[...],
                                preferred_element_type=jnp.float32)

        @pl.when(k == pl.num_programs(1) - 1)
        def _():
            rs = rs_ref[...]                      # (tm, 2) f32: [1/deg, snorm]
            c = c_ref[...]                        # (8, out_p) f32 constants
            y = acc_ref[...]
            y = y * rs[:, 0:1]                    # mean over in-neighbors (f32 1/deg)
            y = y + c[0:1, :]                     # linear bias
            if graph_norm:
                y = y * rs[:, 1:2]                # snorm_n
            if batch_norm:                        # eval-mode BN as per-feature affine
                y = y * c[1:2, :] + c[2:3, :]
            if activation == "relu":
                y = jnp.maximum(y, 0.0)
            if residual:
                y = y + hin_ref[...].astype(jnp.float32)
            # Dropout (eval mode) is identity.
            o_ref[...] = y.astype(o_ref.dtype)

    return kernel


def gcn_layer_forward(adj, h, snorm_n, w_t, bias,
                      bn_gamma, bn_beta, bn_mean, bn_var, bn_eps=1e-5, *,
                      in_deg=None, graph_norm=True, batch_norm=True,
                      residual=True, activation="relu",
                      compute_dtype=jnp.bfloat16, tm=None, tk=None):
    """Eval-mode GCNLayer.forward.

    Args:
      adj:     (N, N) dense 0/1 adjacency, adj[i, j] = 1 iff j is an
               in-neighbor of i (self-loops allowed).  Best supplied already in
               `compute_dtype` (0/1 is exact in bf16) to avoid a cast copy.
      h:       (N, in_dim) node features.
      snorm_n: (N,) or (N, 1) per-node graph-size normalizer.
      w_t:     (in_dim, out_dim) linear weight, pre-transposed ONCE at init.
      bias:    (out_dim,)
      bn_*:    BatchNorm1d parameters / running stats (eval mode).
      in_deg:  optional (N,) precomputed in-degrees (else computed here).
    Returns:
      (N, out_dim) node features in h.dtype.
    """
    assert activation in ("relu", None)
    n, in_dim = h.shape
    in_dim_w, out_dim = w_t.shape
    assert in_dim_w == in_dim
    if residual and in_dim != out_dim:
        residual = False                           # matches the PyTorch module
    out_dtype = h.dtype

    # Mean normalizer kept in f32 (never rounded, regardless of A's dtype).
    if in_deg is None:
        in_deg = jnp.sum(adj.astype(jnp.float32), axis=1)
    inv_deg = 1.0 / jnp.maximum(in_deg.astype(jnp.float32), 1.0)

    # Fold eval-mode BatchNorm1d into a per-feature affine.
    if batch_norm:
        inv_std = jax.lax.rsqrt(bn_var.astype(jnp.float32) + bn_eps)
        bn_scale = bn_gamma.astype(jnp.float32) * inv_std
        bn_shift = bn_beta.astype(jnp.float32) - bn_mean.astype(jnp.float32) * bn_scale
    else:
        bn_scale = jnp.ones((out_dim,), jnp.float32)
        bn_shift = jnp.zeros((out_dim,), jnp.float32)

    snorm_col = (snorm_n.reshape(n, 1).astype(jnp.float32) if graph_norm
                 else jnp.ones((n, 1), jnp.float32))

    # Tiny graphs: pallas launch + DMA setup dominate -> plain jnp.
    if n < 64:
        hw = jnp.dot(h.astype(jnp.float32), w_t.astype(jnp.float32))
        y = jnp.dot(adj.astype(jnp.float32), hw) * inv_deg[:, None]
        y = y + bias.astype(jnp.float32)
        if graph_norm:
            y = y * snorm_col
        y = y * bn_scale + bn_shift
        if activation == "relu":
            y = jnp.maximum(y, 0.0)
        if residual:
            y = y + h.astype(jnp.float32)
        return y.astype(out_dtype)

    # Reassociate: A01 @ (H @ W^T).  HW is a one-shot (N, out_dim) matmul, tiny
    # compared to the N^2 aggregation below.
    hw = jnp.dot(h, w_t, preferred_element_type=jnp.float32).astype(compute_dtype)
    a01 = adj if adj.dtype == compute_dtype else adj.astype(compute_dtype)

    out_p = _round_up(out_dim, 128)                # lane-dense output stores
    item = jnp.dtype(compute_dtype).itemsize
    out_item = jnp.dtype(out_dtype).itemsize
    budget, vmem_limit = _vmem_budget()

    if tm is None or tk is None:
        tm_sel, tk_sel = _choose_tiles(n, out_p, item, out_item, residual, budget)
        tm = tm if tm is not None else tm_sel
        tk = tk if tk is not None else tk_sel
    assert tm % 8 == 0 and tk % 128 == 0

    n_rows_p = _round_up(n, tm)
    n_cols_p = _round_up(_round_up(n, 128), tk)    # == round_up(n,128) for auto tk
    grid = (n_rows_p // tm, n_cols_p // tk)

    def _pad2d(x, rows, cols):
        # Only materializes a padded copy when the shape actually changes.
        if x.shape == (rows, cols):
            return x
        return jnp.zeros((rows, cols), x.dtype).at[:x.shape[0], :x.shape[1]].set(x)

    a_p = _pad2d(a01, n_rows_p, n_cols_p)
    hw_p = _pad2d(hw, n_cols_p, out_p)
    rowscale = jnp.concatenate([inv_deg[:, None], snorm_col], axis=1)  # (n, 2) f32
    rs_p = _pad2d(rowscale, n_rows_p, 2)
    consts = jnp.zeros((8, out_p), jnp.float32)
    consts = consts.at[0, :out_dim].set(bias.astype(jnp.float32))
    consts = consts.at[1, :out_dim].set(bn_scale)
    consts = consts.at[2, :out_dim].set(bn_shift)

    in_specs = [
        pl.BlockSpec((tm, tk), lambda i, k: (i, k)),       # A01 row x K tile
        pl.BlockSpec((tk, out_p), lambda i, k: (k, 0)),    # HW K tile
        pl.BlockSpec((tm, 2), lambda i, k: (i, 0)),        # [1/deg, snorm] rows
        pl.BlockSpec((8, out_p), lambda i, k: (0, 0)),     # packed bias/BN consts
    ]
    inputs = [a_p, hw_p, rs_p, consts]
    if residual:
        assert in_dim == out_dim                           # guards the (tm,out_p) tile
        in_specs.append(pl.BlockSpec((tm, out_p), lambda i, k: (i, 0)))
        inputs.append(_pad2d(h, n_rows_p, out_p))

    flops = 2 * n_rows_p * n_cols_p * out_p
    bytes_accessed = (n_rows_p * n_cols_p * item
                      + n_cols_p * out_p * item
                      + n_rows_p * out_p * out_item * (2 if residual else 1)
                      + n_rows_p * 2 * 4 + 8 * out_p * 4)
    cost = pl.CostEstimate(flops=int(flops), transcendentals=0,
                           bytes_accessed=int(bytes_accessed))

    out = pl.pallas_call(
        _make_gcn_kernel(graph_norm, batch_norm, residual, activation),
        out_shape=jax.ShapeDtypeStruct((n_rows_p, out_p), out_dtype),
        grid_spec=pltpu.PrefetchScalarGridSpec(
            num_scalar_prefetch=0,
            grid=grid,
            in_specs=in_specs,
            out_specs=pl.BlockSpec((tm, out_p), lambda i, k: (i, 0)),
            scratch_shapes=[pltpu.VMEM((tm, out_p), jnp.float32)],
        ),
        compiler_params=pltpu.CompilerParams(
            dimension_semantics=("parallel", "arbitrary"),
            vmem_limit_bytes=vmem_limit,
        ),
        cost_estimate=cost,
    )(*inputs)

    if n_rows_p != n or out_p != out_dim:
        out = out[:n, :out_dim]
    return out


if __name__ == "__main__":
    # 1024 nodes, 128 -> 128 features: lane-dense, residual-eligible, and fully
    # tile-aligned so the wrapper performs zero pad copies.  Auto tiling picks
    # tm=128, tk=1024 -> grid (8, 1): 8 parallel row steps, 1 K step.
    N, IN_DIM, OUT_DIM = 1024, 128, 128

    key = jax.random.PRNGKey(0)
    k_adj, k_h, k_w, k_b, k_g, k_bt, k_m, k_v = jax.random.split(key, 8)

    # Random 0/1 adjacency with self-loops (in-degree >= 1), stored directly in
    # bf16 (exact for 0/1) so the kernel wrapper never re-casts or re-pads it.
    adj_bool = jax.random.uniform(k_adj, (N, N)) < 0.01
    adj_bool = jnp.logical_or(adj_bool, jnp.eye(N, dtype=bool))
    adj = adj_bool.astype(jnp.bfloat16)
    in_deg = adj_bool.astype(jnp.float32).sum(axis=1)

    h = jax.random.normal(k_h, (N, IN_DIM), jnp.float32)
    snorm_n = jnp.full((N, 1), 1.0 / (N ** 0.5), jnp.float32)

    # nn.Linear(in_dim, out_dim)-style parameters; transpose ONCE at init.
    bound = 1.0 / (IN_DIM ** 0.5)
    weight = jax.random.uniform(k_w, (OUT_DIM, IN_DIM), jnp.float32, -bound, bound)
    bias = jax.random.uniform(k_b, (OUT_DIM,), jnp.float32, -bound, bound)
    w_t = weight.T                                        # (in_dim, out_dim)

    # BatchNorm1d (eval mode) parameters and running stats.
    bn_gamma = 1.0 + 0.1 * jax.random.normal(k_g, (OUT_DIM,), jnp.float32)
    bn_beta = 0.1 * jax.random.normal(k_bt, (OUT_DIM,), jnp.float32)
    bn_mean = 0.1 * jax.random.normal(k_m, (OUT_DIM,), jnp.float32)
    bn_var = jax.random.uniform(k_v, (OUT_DIM,), jnp.float32, 0.5, 1.5)

    out = gcn_layer_forward(adj, h, snorm_n, w_t, bias,
                            bn_gamma, bn_beta, bn_mean, bn_var,
                            in_deg=in_deg,
                            graph_norm=True, batch_norm=True, residual=True)
    out = jax.block_until_ready(out)

    # Pure-JAX reference (torch semantics: mean agg -> Linear -> graph_norm ->
    # eval-mode BN -> ReLU -> residual; dropout = identity).
    hi = jax.lax.Precision.HIGHEST
    a_norm = adj_bool.astype(jnp.float32) / in_deg[:, None]
    agg = jnp.dot(a_norm, h, precision=hi)
    y = jnp.dot(agg, weight.T, precision=hi) + bias
    y = y * snorm_n
    y = (y - bn_mean) / jnp.sqrt(bn_var + 1e-5) * bn_gamma + bn_beta
    y = jnp.maximum(y, 0.0)
    ref = h + y

    assert out.shape == (N, OUT_DIM), out.shape
    assert out.dtype == h.dtype
    err = float(jnp.max(jnp.abs(out.astype(jnp.float32) - ref)))
    assert jnp.allclose(out.astype(jnp.float32), ref, atol=2e-2, rtol=2e-2), err

    print("KERNEL_OK")
</pallas_src>

<mosaic_0001>
module attributes {stable_mosaic.version = 11 : i64} {
  func.func @kernel(%arg0: i32, %arg1: i32, %arg2: memref<128x1024xbf16, #tpu.memory_space<vmem>>, %arg3: memref<1024x128xbf16, #tpu.memory_space<vmem>>, %arg4: memref<128x2xf32, #tpu.memory_space<vmem>>, %arg5: memref<8x128xf32, #tpu.memory_space<vmem>>, %arg6: memref<128x128xf32, #tpu.memory_space<vmem>>, %arg7: memref<128x128xf32, #tpu.memory_space<vmem>>, %arg8: memref<128x128xf32, #tpu.memory_space<vmem>>) attributes {dimension_semantics = [#tpu.dimension_semantics<parallel>, #tpu.dimension_semantics<arbitrary>], iteration_bounds = array<i64: 8, 1>, scalar_prefetch = 0 : i64, scratch_operands = 1 : i64, tpu.core_type = #tpu.core_type<tc>, window_params = [{transform_indices = @transform_0, window_bounds = array<i64: 128, 1024>}, {transform_indices = @transform_1, window_bounds = array<i64: 1024, 128>}, {transform_indices = @transform_2, window_bounds = array<i64: 128, 2>}, {pipeline_mode = #tpu.pipeline_mode<synchronous>, transform_indices = @transform_3, window_bounds = array<i64: 8, 128>}, {transform_indices = @transform_4, window_bounds = array<i64: 128, 128>}, {transform_indices = @transform_5, window_bounds = array<i64: 128, 128>}]} {
    %c0_i32 = arith.constant 0 : i32
    %0 = arith.cmpi eq, %arg1, %c0_i32 : i32
    %1 = arith.extui %0 : i1 to i32
    %c0_i32_0 = arith.constant 0 : i32
    %2 = arith.cmpi ne, %1, %c0_i32_0 : i32
    scf.if %2 {
      %cst_10 = arith.constant 0.000000e+00 : f32
      %12 = vector.broadcast %cst_10 : f32 to vector<128x128xf32>
      %c0_11 = arith.constant 0 : index
      %c0_12 = arith.constant 0 : index
      %13 = vector.load %arg8[%c0_11, %c0_12] : memref<128x128xf32, #tpu.memory_space<vmem>>, vector<128x128xf32>
      tpu.vector_store %arg8[%c0_11, %c0_12], %12 {strides = array<i32>} : memref<128x128xf32, #tpu.memory_space<vmem>>, vector<128x128xf32>,
    } else {
    }
    %c0 = arith.constant 0 : index
    %c0_1 = arith.constant 0 : index
    %3 = vector.load %arg8[%c0, %c0_1] : memref<128x128xf32, #tpu.memory_space<vmem>>, vector<128x128xf32>
    %c0_2 = arith.constant 0 : index
    %c0_3 = arith.constant 0 : index
    %4 = vector.load %arg2[%c0_2, %c0_3] : memref<128x1024xbf16, #tpu.memory_space<vmem>>, vector<128x1024xbf16>
    %c0_4 = arith.constant 0 : index
    %c0_5 = arith.constant 0 : index
    %5 = vector.load %arg3[%c0_4, %c0_5] : memref<1024x128xbf16, #tpu.memory_space<vmem>>, vector<1024x128xbf16>
    %cst = arith.constant dense<0.000000e+00> : vector<128x128xf32>
    %6 = tpu.matmul %4, %5, %cst {dimension_numbers = #tpu.dot_dimension_numbers<[1], [0], [0], [1], [0, 0, 1, 1], [], []>} : vector<128x1024xbf16>, vector<1024x128xbf16>, vector<128x128xf32> -> vector<128x128xf32>
    %7 = arith.addf %3, %6 : vector<128x128xf32>
    %c0_6 = arith.constant 0 : index
    %c0_7 = arith.constant 0 : index
    %8 = vector.load %arg8[%c0_6, %c0_7] : memref<128x128xf32, #tpu.memory_space<vmem>>, vector<128x128xf32>
    tpu.vector_store %arg8[%c0_6, %c0_7], %7 {strides = array<i32>} : memref<128x128xf32, #tpu.memory_space<vmem>>, vector<128x128xf32>,
    %c0_i32_8 = arith.constant 0 : i32
    %9 = arith.cmpi eq, %arg1, %c0_i32_8 : i32
    %10 = arith.extui %9 : i1 to i32
    %c0_i32_9 = arith.constant 0 : i32
    %11 = arith.cmpi ne, %10, %c0_i32_9 : i32
    scf.if %11 {
      %c0_10 = arith.constant 0 : index
      %c0_11 = arith.constant 0 : index
      %12 = vector.load %arg4[%c0_10, %c0_11] : memref<128x2xf32, #tpu.memory_space<vmem>>, vector<128x2xf32>
      %c0_12 = arith.constant 0 : index
      %c0_13 = arith.constant 0 : index
      %13 = vector.load %arg5[%c0_12, %c0_13] : memref<8x128xf32, #tpu.memory_space<vmem>>, vector<8x128xf32>
      %c0_14 = arith.constant 0 : index
      %c0_15 = arith.constant 0 : index
      %14 = vector.load %arg8[%c0_14, %c0_15] : memref<128x128xf32, #tpu.memory_space<vmem>>, vector<128x128xf32>
      %15 = vector.extract_strided_slice %12 {offsets = [0, 0], sizes = [128, 1], strides = [1, 1]} : vector<128x2xf32> to vector<128x1xf32>
      %16 = vector.broadcast %15 : vector<128x1xf32> to vector<128x128xf32>
      %17 = arith.mulf %14, %16 : vector<128x128xf32>
      %18 = vector.extract_strided_slice %13 {offsets = [0, 0], sizes = [1, 128], strides = [1, 1]} : vector<8x128xf32> to vector<1x128xf32>
      %19 = vector.broadcast %18 : vector<1x128xf32> to vector<128x128xf32>
      %20 = arith.addf %17, %19 : vector<128x128xf32>
      %21 = vector.extract_strided_slice %12 {offsets = [0, 1], sizes = [128, 1], strides = [1, 1]} : vector<128x2xf32> to vector<128x1xf32>
      %22 = vector.broadcast %21 : vector<128x1xf32> to vector<128x128xf32>
      %23 = arith.mulf %20, %22 : vector<128x128xf32>
      %24 = vector.extract_strided_slice %13 {offsets = [1, 0], sizes = [1, 128], strides = [1, 1]} : vector<8x128xf32> to vector<1x128xf32>
      %25 = vector.broadcast %24 : vector<1x128xf32> to vector<128x128xf32>
      %26 = arith.mulf %23, %25 : vector<128x128xf32>
      %27 = vector.extract_strided_slice %13 {offsets = [2, 0], sizes = [1, 128], strides = [1, 1]} : vector<8x128xf32> to vector<1x128xf32>
      %28 = vector.broadcast %27 : vector<1x128xf32> to vector<128x128xf32>
      %29 = arith.addf %26, %28 : vector<128x128xf32>
      %cst_16 = arith.constant 0.000000e+00 : f32
      %30 = vector.broadcast %cst_16 : f32 to vector<128x128xf32>
      %31 = arith.maximumf %29, %30 : vector<128x128xf32>
      %c0_17 = arith.constant 0 : index
      %c0_18 = arith.constant 0 : index
      %32 = vector.load %arg6[%c0_17, %c0_18] : memref<128x128xf32, #tpu.memory_space<vmem>>, vector<128x128xf32>
      %33 = arith.addf %31, %32 : vector<128x128xf32>
      %c0_19 = arith.constant 0 : index
      %c0_20 = arith.constant 0 : index
      %34 = vector.load %arg7[%c0_19, %c0_20] : memref<128x128xf32, #tpu.memory_space<vmem>>, vector<128x128xf32>
      tpu.vector_store %arg7[%c0_19, %c0_20], %33 {strides = array<i32>} : memref<128x128xf32, #tpu.memory_space<vmem>>, vector<128x128xf32>,
    } else {
    }
    return
  }
  func.func @transform_0(%arg0: i32, %arg1: i32) -> (i32, i32) {
    %c0_i32 = arith.constant 0 : i32
    return %arg0, %arg1 : i32, i32
  }
  func.func @transform_1(%arg0: i32, %arg1: i32) -> (i32, i32) {
    %c0_i32 = arith.constant 0 : i32
    %c0_i32_0 = arith.constant 0 : i32
    return %arg1, %c0_i32 : i32, i32
  }
  func.func @transform_2(%arg0: i32, %arg1: i32) -> (i32, i32) {
    %c0_i32 = arith.constant 0 : i32
    %c0_i32_0 = arith.constant 0 : i32
    return %arg0, %c0_i32 : i32, i32
  }
  func.func @transform_3(%arg0: i32, %arg1: i32) -> (i32, i32) {
    %c0_i32 = arith.constant 0 : i32
    %c0_i32_0 = arith.constant 0 : i32
    %c0_i32_1 = arith.constant 0 : i32
    return %c0_i32, %c0_i32_0 : i32, i32
  }
  func.func @transform_4(%arg0: i32, %arg1: i32) -> (i32, i32) {
    %c0_i32 = arith.constant 0 : i32
    %c0_i32_0 = arith.constant 0 : i32
    return %arg0, %c0_i32 : i32, i32
  }
  func.func @transform_5(%arg0: i32, %arg1: i32) -> (i32, i32) {
    %c0_i32 = arith.constant 0 : i32
    %c0_i32_0 = arith.constant 0 : i32
    return %arg0, %c0_i32 : i32, i32
  }
}

</mosaic_0001>

<bundles_post_ra>
// kernel: tpu_custom_call.1
= control target key start
LH: loop header
LB: loop body
LE: loop exit
PB: predicated region body
PF: predicated region fallthrough
CT: control target
= control target key end

     0   :  { %s3725_s0 = inlined_call_operand.hbm [shape: bf16[1024,1024], index: 0, kind: input, shape index: {}]   ;;  %s3726_s1 = inlined_call_operand.hbm [shape: bf16[1024,128], index: 1, kind: input, shape index: {}]   ;;  %s3727_s2 = inlined_call_operand.vmem [shape: f32[1024,2], index: 2, kind: input, shape index: {}]   ;;  %s3728_s3 = inlined_call_operand.hbm [shape: f32[8,128], index: 3, kind: input, shape index: {}]   ;;  %s3729_s4 = inlined_call_operand.hbm [shape: f32[1024,128], index: 4, kind: input, shape index: {}]   ;;  %s3730_s5 = inlined_call_operand.hbm [shape: f32[1024,128], index: 5, kind: output, shape index: {}]  }
   0x1   :  { %3737 = sst [smem:[#allocation50_spill]] %s3725_s0 }
   0x2   :  { %3738 = sst [smem:[#allocation51_spill]] %s3726_s1 }
   0x3   :  { %3739 = sst [smem:[#allocation52_spill]] %s3728_s3 }
   0x4   :  { %10 = vsyncpa [#allocation4], 0 }
   0x5   :  { %12 = vsyncpa [#allocation4 + $0x1], 0 }
   0x6   :  { %13 = vsyncpa [#allocation7], 0 }
   0x7   :  { %14 = vsyncpa [#allocation10], 0 }
   0x8   :  { %16 = vsyncpa [#allocation10 + $0x1], 0 }
   0x9   :  { %17 = vsyncpa [#allocation5], 0 }
   0xa   :  { %19 = vsyncpa [#allocation5 + $0x1], 0  ;;  %s3028_s18 = smov 0   ;;  %s3030_s19 = smov 0  }
   0xb   :  { %s3032_s20 = smov 0   ;;  %s3034_s21 = smov 0  }
   0xc   :  { %s3036_s22 = smov 0   ;;  %s3038_s23 = smov 0  }
   0xd LB: > { %3740 = sst [smem:[#allocation16_spill]] %s2969_s20  ;;  %s2205_s24 = sadd.s32 4294967295, %s2981_s23   ;;  %s2981_s23 = sphi %s3038_s23, %s25_s23   ;;  %s2977_s22 = sphi %s3036_s22, %s3826_s22   ;;  %s2973_s21 = sphi %s3034_s21, %s3825_s21   ;;  %s2969_s20 = sphi %s3032_s20, %s3821_s20   ;;  %s2965_s19 = sphi %s3030_s19, %s3824_s19   ;;  %s2961_s18 = sphi %s3028_s18, %s3823_s18  }
   0xe   : > { %s2206_s25 = sadd.s32 4294967294, %s2981_s23   ;;  %s46_s26 = sadd.s32 1, %s2969_s20 }
   0xf   : > { %p53_p0 = scmp.ne.s32.totalorder %s2969_s20, %s2965_s19  ;;  %p54_p1 = scmp.eq.s32.totalorder %s2981_s23, 0 }
  0x10   : > { %p59_p2 = scmp.ne.s32.totalorder %s2965_s19, %s2961_s18  ;;  %p3066_p3 = scmp.eq.s32.totalorder %s2205_s24, 0 }
  0x11   : > { %p182_p4 = scmp.eq.s32.totalorder %s2205_s24, 7  ;;  %p3070_p5 = por %p54_p1, %p53_p0 }
  0x12   : > { %s3741_s27 = scalar_select %p3066_p3, 1, 0 }
  0x13   : > { %p188_p6 = scmp.eq.s32.totalorder %s2206_s25, 7  ;;  %p3076_p7 = por %p3066_p3, %p59_p2 }
  0x14   : > { %p3080_p8 = por %p182_p4, %p53_p0  ;;  %p2207_p10 = scmp.ge.s32.totalorder %s2981_s23, 1 }
  0x15   : > { %s3743_s29 = scalar_select %p3076_p7, 1, 0 }
  0x16   : > { %s3744_s30 = scalar_select %p3080_p8, 1, 0 }
  0x17   : > { %p3084_p9 = por %p188_p6, %p59_p2  ;;  %p195_p11 = scmp.lt.s32.totalorder %s2981_s23, 9 }
  0x18   : > { %s2983_s8 = smov [#allocation6]   ;;  %s2984_s11 = smov [#allocation8]  }
  0x19   : > { %s3745_s6 = scalar_select %p3084_p9, 1, 0 }
  0x1a   : > { %p3090_p12 = pnand %p2207_p10, %p195_p11  ;;  %s210_s9 = sshll.u32 %s2983_s8, 4  ;;  %s211_s9 = int_to_ptr.vmem [resolvable:$true] %s210_s9 }
  0x1b   : > { %s224_s12 = sshll.u32 %s2984_s11, 4  ;;  %s37_s13 = sadd.s32 1, %s2977_s22  ;;  %s225_s12 = int_to_ptr.vmem [resolvable:$true] %s224_s12 }
  0x1c   : > { %p2633_p13 = pneg %p3090_p12  ;;  %s2796_s14 = scalar_lea.vmem %s211_s9, 8192 }
  0x1d   : > { %p2797_p2 = scmp.ne.s32.totalorder %s211_s9, %s2796_s14  ;;  %p2804_p10 = scmp.lt.s32.totalorder %s211_s9, %s211_s9 }
  0x1e   : > { %p3098_p0 = pnand %p2633_p13, %p3066_p3  ;;  %p2805_p11 = scmp.lt.s32.totalorder %s2796_s14, %s2796_s14 }
  0x20   : > { %p2787_p1 = pneg %p3098_p0  ;;  %p2806_p13 = por %p2805_p11, %p2804_p10 }
  0x22   : > { %p2799_p4 = pnand %p2797_p2, %p2787_p1 }
  0x24   : > { %p2800_p6 = pneg %p2799_p4 }
  0x26   : > { %p2807_p9 = pnand %p2806_p13, %p2800_p6 }
  0x28   : > { %2810 = shalt.err (!%p2807_p9)
}
  0x29   : > { %s2985_s15 = smov 64   ;;  %s2986_s16 = smov 4  }
  0x2a   : > { %s3748_s1 = sld [smem:[#allocation51_spill]]  ;;  %s2822_s25 = scalar_lea.vmem %s225_s12, 128 }
  0x2b   : > { %p2823_p8 = scmp.ne.s32.totalorder %s225_s12, %s2822_s25  ;;  %p2830_p3 = scmp.lt.s32.totalorder %s225_s12, %s225_s12 }
  0x2c   : > { %p2831_p7 = scmp.lt.s32.totalorder %s2822_s25, %s2822_s25 }
  0x2d   : > { %p2825_p2 = pnand %p2823_p8, %p2787_p1 }
  0x2e   : > { %p2832_p10 = por %p2831_p7, %p2830_p3 }
  0x2f   : > { %p2826_p4 = pneg %p2825_p2 }
  0x30   : > { %2636 = dma.hbm_to_vmem [thread:$0]  (!%p3098_p0), %s3748_s1, 8192, %s211_s9, [#allocation7], %s2985_s15, %s2985_s15, %s2986_s16  }
  0x31   : > { %p2833_p6 = pnand %p2832_p10, %p2826_p4 }
  0x33   : > { %2836 = shalt.err (!%p2833_p6)
}
  0x34   : > { %s3749_s3 = sld [smem:[#allocation52_spill]]  ;;  %p39_p8 = scmp.ge.s32.totalorder %s37_s13, 8 }
  0x35   : > { %p2653_p9 = scmp.lt.s32.totalorder %s2981_s23, 8  ;;  %s3123_s9 = sand.u32 1, %s2969_s20  }
  0x36   : > { %s2360_s14 = sshll.u32 %s2977_s22, 13  ;;  %s3828_s13 = smov (%p39_p8, %s37_s13), 0 }
  0x37   : > { %3750 = sst [smem:[#allocation17_spill]] %s3828_s13  ;;  %s2211_s10 = sshll.u32 %s3123_s9, 9 }
  0x38   : > { %s41_s15 = ssub.s32 %s2977_s22, %s3828_s13  ;;  %s3751_s0 = sld [smem:[#allocation50_spill]] }
  0x39   : > { %p44_p3 = scmp.eq.s32.totalorder %s41_s15, 0  ;;  %s239_s25 = scalar_lea.vmem [#allocation3], %s2211_s10 }
  0x3a   : > { %2639 = dma.hbm_to_vmem [thread:$0]  (!%p3098_p0), %s3749_s3, 128, %s225_s12, [#allocation7]  }
  0x3b   : > { %s249_s8 = sshll.u32 %s239_s25, 4  ;;  %p3136_p7 = pnand %p2653_p9, %p3070_p5  ;;  %s250_s8 = int_to_ptr.vmem [resolvable:$true] %s249_s8 }
  0x3c   : > { %s3143_s11 = scalar_select %p44_p3, %s2969_s20, %s46_s26  }
  0x3d   : > { %s236_s1 = scalar_lea.sflag [#allocation4], %s3123_s9  ;;  %p2839_p0 = pneg %p3136_p7 }
  0x3e   : > { %s248_s24 = scalar_lea.hbm %s3751_s0, %s2360_s14  ;;  %3753 = sst [smem:[#allocation18_spill]] %s3143_s11 }
  0x3f   : > { %s2850_s15 = scalar_lea.vmem %s250_s8, 8192  ;;  %s2987_s28 = smov [#allocation3]  }
  0x40   : > { %p2851_p1 = scmp.ne.s32.totalorder %s250_s8, %s2850_s15  ;;  %s2855_s14 = sshll.u32 %s2987_s28, 4  ;;  %s2856_s14 = int_to_ptr.vmem [resolvable:$false] %s2855_s14 }
  0x41   : > { %s2857_s10 = scalar_lea.vmem %s2856_s14, 16384  ;;  %p2858_p5 = scmp.lt.s32.totalorder %s250_s8, %s2856_s14 }
  0x42   : > { %p2853_p11 = pnand %p2851_p1, %p2839_p0  ;;  %p2859_p2 = scmp.lt.s32.totalorder %s2857_s10, %s2850_s15 }
  0x44   : > { %p2854_p13 = pneg %p2853_p11  ;;  %p2860_p4 = por %p2859_p2, %p2858_p5 }
  0x46   : > { %p2861_p10 = pnand %p2860_p4, %p2854_p13 }
  0x48   : > { %2864 = shalt.err (!%p2861_p10)
}
  0x49   : > { %s2988_s26 = smov 512   ;;  %s2989_s16 = smov 32  }
  0x4a   : > { %2643 = dma.hbm_to_vmem [thread:$0]  (!%p3136_p7), %s248_s24, 8192, %s250_s8, %s236_s1, %s2988_s26, %s2988_s26, %s2989_s16  }
  0x4b   : > { %s2215_s17 = sshll.u32 %s3123_s9, 7  ;;  %s2361_s25 = sshll.u32 %s2977_s22, 11 }
  0x4c   : > { %s278_s3 = scalar_lea.hbm %s3729_s4, %s2361_s25  ;;  %s272_s14 = scalar_lea.vmem [#allocation9], %s2215_s17 }
  0x4d   : > { %s279_s15 = sshll.u32 %s272_s14, 4  ;;  %s269_s10 = scalar_lea.sflag [#allocation10], %s3123_s9  ;;  %s280_s15 = int_to_ptr.vmem [resolvable:$true] %s279_s15 }
  0x4e   : > { %s2878_s13 = scalar_lea.vmem %s280_s15, 2048  ;;  %s2990_s11 = smov [#allocation9]  }
  0x4f   : > { %p2879_p6 = scmp.ne.s32.totalorder %s280_s15, %s2878_s13  ;;  %s2883_s20 = sshll.u32 %s2990_s11, 4  ;;  %s2884_s20 = int_to_ptr.vmem [resolvable:$false] %s2883_s20 }
  0x50   : > { %s2885_s1 = scalar_lea.vmem %s2884_s20, 4096  ;;  %p2886_p3 = scmp.lt.s32.totalorder %s280_s15, %s2884_s20 }
  0x51   : > { %p2881_p8 = pnand %p2879_p6, %p2839_p0  ;;  %p2887_p1 = scmp.lt.s32.totalorder %s2885_s1, %s2878_s13 }
  0x53   : > { %p2882_p9 = pneg %p2881_p8  ;;  %p2888_p11 = por %p2887_p1, %p2886_p3 }
  0x55   : > { %p2889_p13 = pnand %p2888_p11, %p2882_p9 }
  0x57   : > { %2892 = shalt.err (!%p2889_p13)
}
  0x58   : > { %s2991_s0 = smov 128   ;;  %s2992_s24 = smov 8  }
  0x59   : > { %2646 = dma.hbm_to_vmem [thread:$0]  (!%p3136_p7), %s278_s3, 2048, %s280_s15, %s269_s10, %s2991_s0, %s2991_s0, %s2992_s24  }
  0x5a   : > { %291 = sbr.rel (%p3090_p12) target bundleno = 492 (0x1ec), region = 40 }
  0x5f   : > { %s3167_s9 = sand.u32 1, %s2965_s19   ;;  %p3754_p0 = scmp.ne.s32.totalorder %s3743_s29, 0 }
  0x60   : > { %s2219_s8 = sshll.u32 %s3167_s9, 9  ;;  %s294_s20 = scalar_lea.sflag [#allocation4], %s3167_s9 }
  0x61   : > { %s3171_s13 = scalar_lea.vmem [#allocation3], %s2219_s8 }
  0x62   : > { %2944 = dma.done.wait (%p3754_p0), %s294_s20, 8192  }
  0x63   : > { %2946 = vsyncadd (%p3754_p0), %s294_s20, 4294959104  ;;  %p3755_p7 = scmp.ne.s32.totalorder %s3741_s27, 0 }
  0x65   : > { %2948 = dma.done.wait (%p3755_p7), [#allocation7], 8320  }
  0x66   : > { %2950 = vsyncadd (%p3755_p7), [#allocation7], 4294958976  ;;  %s2222_s3 = sshll.u32 %s3167_s9, 7  ;;  %s311_s7 = scalar_lea.sflag [#allocation10], %s3167_s9 }
  0x67   : > { %s3185_s12 = scalar_lea.vmem [#allocation9], %s2222_s3 }
  0x68   : > { %2952 = dma.done.wait (%p3754_p0), %s311_s7, 2048  }
  0x69   : > { %2954 = vsyncadd (%p3754_p0), %s311_s7, 4294965248  ;;  %v2721_v0 = vld [vmem:[#allocation6 + $0x78] sm:$0xff]   ;;  %v2725_v4 = vld [vmem:[#allocation6 + $0x70] sm:$0xff]   ;;  %v2993_v15 = vmov 0   ;;  %s2224_s27 = sshll.u32 %s2973_s21, 4  ;;  %s3550_s17 = scalar_lea.vmem [#allocation11], %s2222_s3 }
  0x6a   : > { %v2722_v1 = vld [vmem:[#allocation6 + $0xf8] sm:$0xff]   ;;  %2363 = vmatprep.subr.bf16.mxu0 %v2721_v0  ;;  %v2726_v5 = vld [vmem:[#allocation6 + $0xf0] sm:$0xff]   ;;  %v2729_v8 = vld [vmem:[#allocation6 + $0x68] sm:$0xff]   ;;  %2717 = vset.pattern.permute.xlu0 %v2993_v15  ;;  %p355_p12 = scmp.lt.s32.totalorder %s2224_s27, 127  ;;  %s2362_s25 = sshll.u32 %s2973_s21, 11 }
  0x6b   : > { %v2723_v2 = vld [vmem:[#allocation6 + $0x38] sm:$0xff]   ;;  %2427 = vmatprep.subr.bf16.mxu1 %v2722_v1  ;;  %v2727_v6 = vld [vmem:[#allocation6 + $0x30] sm:$0xff]   ;;  %v2730_v9 = vld [vmem:[#allocation6 + $0xe8] sm:$0xff]   ;;  %2718 = vset.pattern.permute.xlu1 %v2993_v15  ;;  %s2065_s28 = sshll.u32 %s3550_s17, 4  ;;  %s3675_s10 = scalar_lea.hbm %s3730_s5, %s2362_s25  ;;  %s3677_s28 = int_to_ptr.vmem [resolvable:$true] %s2065_s28 }
  0x6c   : > { %v2724_v3 = vld [vmem:[#allocation6 + $0xb8] sm:$0xff]   ;;  %2364 = vmatpush3.bf16.msra.mxu0 %v2723_v2  ;;  %v2728_v7 = vld [vmem:[#allocation6 + $0xb0] sm:$0xff]   ;;  %v2731_v10 = vld [vmem:[#allocation6 + $0x28] sm:$0xff]   ;;  %s3830_s27 = smov (!%p355_p12, %s2224_s27), 127  ;;  %s2052_s1 = scalar_lea.sflag [#allocation5], %s3167_s9 }
  0x6d   : > { %2428 = vmatpush3.bf16.msra.mxu1 %v2724_v3  ;;  %2365 = vmatprep.subr.bf16.mxu0 %v2725_v4  ;;  %v2732_v11 = vld [vmem:[#allocation6 + $0xa8] sm:$0xff]   ;;  %v2733_v12 = vld [vmem:[#allocation6 + $0x60] sm:$0xff]   ;;  %v2737_v17 = vld [vmem:[#allocation6 + $0x58] sm:$0xff]   ;;  %s2225_s29 = sshll.u32 %s3830_s27, 3  ;;  %s2893_s0 = scalar_lea.vmem %s3677_s28, 2048 }
  0x6e   : > { %2429 = vmatprep.subr.bf16.mxu1 %v2726_v5  ;;  %v2734_v13 = vld [vmem:[#allocation6 + $0xe0] sm:$0xff]   ;;  %v2738_v18 = vld [vmem:[#allocation6 + $0xd8] sm:$0xff]   ;;  %v2741_v21 = vld [vmem:[#allocation6 + $0x50] sm:$0xff]   ;;  %s3227_s16 = scalar_lea.vmem %s3727_s2, %s2225_s29  ;;  %p2894_p5 = scmp.ne.s32.totalorder %s3677_s28, %s2893_s0 }
  0x6f   : > { %v2735_v14 = vld [vmem:[#allocation6 + $0x20] sm:$0xff]   ;;  %v2739_v19 = vld [vmem:[#allocation6 + $0x18] sm:$0xff]   ;;  %v2742_v22 = vld [vmem:[#allocation6 + $0xd0] sm:$0xff]   ;;  %p3818_p2 = scmp.ne.s32.totalorder %s3744_s30, 0  ;;  %s2995_s21 = smov [#allocation11]  }
  0x70   : > { %2366 = vmatpush3.bf16.msra.mxu0 %v2727_v6  ;;  %v2736_v16 = vld [vmem:[#allocation6 + $0xa0] sm:$0xff]   ;;  %v2740_v20 = vld [vmem:[#allocation6 + $0x98] sm:$0xff]   ;;  %v2743_v23 = vld [vmem:[#allocation6 + $0x10] sm:$0xff]   ;;  %s2897_s24 = sshll.u32 %s2995_s21, 4  ;;  %s2898_s24 = int_to_ptr.vmem [resolvable:$false] %s2897_s24 }
  0x71   : > { %2430 = vmatpush3.bf16.msra.mxu1 %v2728_v7  ;;  %2367 = vmatprep.subr.bf16.mxu0 %v2729_v8  ;;  %v2744_v24 = vld [vmem:[#allocation6 + $0x90] sm:$0xff]   ;;  %v2745_v25 = vld [vmem:[#allocation6 + $0x48] sm:$0xff]   ;;  %v2749_v29 = vld [vmem:[#allocation6 + $0x40] sm:$0xff]   ;;  %p2895_p4 = pnand %p2894_p5, %p3818_p2  ;;  %s2899_s8 = scalar_lea.vmem %s2898_s24, 4096 }
  0x72   : > { %2431 = vmatprep.subr.bf16.mxu1 %v2730_v9  ;;  %v2746_v26 = vld [vmem:[#allocation6 + $0xc8] sm:$0xff]   ;;  %v2750_v30 = vld [vmem:[#allocation6 + $0xc0] sm:$0xff]   ;;  %v2753_v41 = vld [vmem:[#allocation6 + $0x178] sm:$0xff]   ;;  %p2900_p6 = scmp.lt.s32.totalorder %s3677_s28, %s2898_s24  ;;  %p2901_p8 = scmp.lt.s32.totalorder %s2899_s8, %s2893_s0 }
  0x73   : > { %v2747_v27 = vld [vmem:[#allocation6 + $0x8] sm:$0xff]   ;;  %v2751_v31 = vld [vmem:[#allocation6] sm:$0xff]   ;;  %v2754_v42 = vld [vmem:[#allocation6 + $0x138] sm:$0xff]   ;;  %p2896_p10 = pneg %p2895_p4 }
  0x74   : > { %2368 = vmatpush3.bf16.msra.mxu0 %v2731_v10  ;;  %v2748_v28 = vld [vmem:[#allocation6 + $0x88] sm:$0xff]   ;;  %v2752_v32 = vld [vmem:[#allocation6 + $0x80] sm:$0xff]   ;;  %v2755_v43 = vld [vmem:[#allocation6 + $0x1f8] sm:$0xff]   ;;  %p2902_p9 = por %p2901_p8, %p2900_p6 }
  0x75   : > { %2432 = vmatpush3.bf16.msra.mxu1 %v2732_v11  ;;  %2369 = vmatprep.subr.bf16.mxu0 %v2733_v12  ;;  %v399_v33 = vld [vmem:[%s3171_s13] sm:$0xff]  ;;  %v400_v35 = vld [vmem:[%s3171_s13 + $0x8] sm:$0xff]  ;;  %v2756_v44 = vld [vmem:[#allocation6 + $0x1b8] sm:$0xff]  }
  0x76   : > { %2433 = vmatprep.subr.bf16.mxu1 %v2734_v13  ;;  %v403_v34 = vld [vmem:[%s3171_s13 + $0x20] sm:$0xff]  ;;  %v404_v38 = vld [vmem:[%s3171_s13 + $0x28] sm:$0xff]  ;;  %v2757_v51 = vld [vmem:[#allocation6 + $0x170] sm:$0xff]   ;;  %p2903_p3 = pnand %p2902_p9, %p2896_p10 }
  0x77   : > { %v2226_v36 = vcombine.low %v399_v33, %v403_v34  ;;  %v2227_v37 = vcombine.high %v399_v33, %v403_v34  ;;  %v2228_v39 = vcombine.low %v400_v35, %v404_v38  ;;  %v2229_v40 = vcombine.high %v400_v35, %v404_v38  ;;  %v407_v45 = vld [vmem:[%s3171_s13 + $0x40] sm:$0xff]  ;;  %v408_v48 = vld [vmem:[%s3171_s13 + $0x48] sm:$0xff]  ;;  %v2758_v53 = vld [vmem:[#allocation6 + $0x130] sm:$0xff]  }
  0x78   : > { %2370 = vmatpush3.bf16.msra.mxu0 %v2735_v14  ;;  %v411_v46 = vld [vmem:[%s3171_s13 + $0x60] sm:$0xff]  ;;  %v412_v49 = vld [vmem:[%s3171_s13 + $0x68] sm:$0xff]  ;;  %v2759_v55 = vld [vmem:[#allocation6 + $0x1f0] sm:$0xff]  }
  0x79   : > { %2434 = vmatpush3.bf16.msra.mxu1 %v2736_v16  ;;  %2371 = vmatprep.subr.bf16.mxu0 %v2737_v17  ;;  %v2235_v47 = vcombine.high %v407_v45, %v411_v46  ;;  %v2237_v50 = vcombine.high %v408_v48, %v412_v49  ;;  %v2234_v52 = vcombine.low %v407_v45, %v411_v46  ;;  %v2760_v56 = vld [vmem:[#allocation6 + $0x1b0] sm:$0xff]   ;;  %v415_v57 = vld [vmem:[%s3171_s13 + $0x80] sm:$0xff]  ;;  %v416_v59 = vld [vmem:[%s3171_s13 + $0x88] sm:$0xff] }
  0x7a   : > { %2435 = vmatprep.subr.bf16.mxu1 %v2738_v18  ;;  %1327 = vmatprep.mubr.bf16.mxu0 %v2227_v37  ;;  %v2236_v54 = vcombine.low %v408_v48, %v412_v49  ;;  %v419_v58 = vld [vmem:[%s3171_s13 + $0xa0] sm:$0xff]  ;;  %v420_v60 = vld [vmem:[%s3171_s13 + $0xa8] sm:$0xff]  ;;  %v2775_v33 = vld [vmem:[#allocation6 + $0x1d0] sm:$0xff]  }
  0x7b   : > { %1424 = vmatprep.mubr.bf16.mxu1 %v2229_v40  ;;  %v2243_v61 = vcombine.high %v415_v57, %v419_v58  ;;  %v2245_v62 = vcombine.high %v416_v59, %v420_v60  ;;  %v2761_v63 = vld [vmem:[#allocation6 + $0x168] sm:$0xff]   ;;  %v2242_v3 = vcombine.low %v415_v57, %v419_v58  ;;  %v423_v4 = vld [vmem:[%s3171_s13 + $0xc0] sm:$0xff]  ;;  %v2244_v7 = vcombine.low %v416_v59, %v420_v60  ;;  %v2776_v34 = vld [vmem:[#allocation6 + $0x190] sm:$0xff]  }
  0x7c   : > { %2372 = vmatpush3.bf16.msra.mxu0 %v2739_v19  ;;  %v2762_v0 = vld [vmem:[#allocation6 + $0x128] sm:$0xff]   ;;  %v427_v5 = vld [vmem:[%s3171_s13 + $0xe0] sm:$0xff]  ;;  %v2769_v19 = vld [vmem:[#allocation6 + $0x158] sm:$0xff]  }
  0x7d   : > { %2436 = vmatpush3.bf16.msra.mxu1 %v2740_v20  ;;  %2373 = vmatprep.subr.bf16.mxu0 %v2741_v21  ;;  %v2763_v1 = vld [vmem:[#allocation6 + $0x1e8] sm:$0xff]   ;;  %v2251_v8 = vcombine.high %v423_v4, %v427_v5  ;;  %v2765_v11 = vld [vmem:[#allocation6 + $0x160] sm:$0xff]   ;;  %v2250_v20 = vcombine.low %v423_v4, %v427_v5  ;;  %v2770_v21 = vld [vmem:[#allocation6 + $0x118] sm:$0xff]  }
  0x7e   : > { %2437 = vmatprep.subr.bf16.mxu1 %v2742_v22  ;;  %v2764_v2 = vld [vmem:[#allocation6 + $0x1a8] sm:$0xff]   ;;  %v2766_v12 = vld [vmem:[#allocation6 + $0x120] sm:$0xff]   ;;  %v406_v4 = vld [vmem:[%s3171_s13 + $0x38] sm:$0xff] }
  0x7f   : > { %v424_v6 = vld [vmem:[%s3171_s13 + $0xc8] sm:$0xff]  ;;  %v2767_v13 = vld [vmem:[#allocation6 + $0x1e0] sm:$0xff]  }
  0x80   : > { %2374 = vmatpush3.bf16.msra.mxu0 %v2743_v23  ;;  %v428_v9 = vld [vmem:[%s3171_s13 + $0xe8] sm:$0xff]  ;;  %v2768_v14 = vld [vmem:[#allocation6 + $0x1a0] sm:$0xff]  }
  0x81   : > { %2438 = vmatpush3.bf16.msra.mxu1 %v2744_v24  ;;  %2375 = vmatprep.subr.bf16.mxu0 %v2745_v25  ;;  %v2253_v10 = vcombine.high %v424_v6, %v428_v9  ;;  %v431_v15 = vld [vmem:[%s3171_s13 + $0x100] sm:$0xff]  ;;  %v432_v17 = vld [vmem:[%s3171_s13 + $0x108] sm:$0xff]  ;;  %v2252_v22 = vcombine.low %v424_v6, %v428_v9  ;;  %v2771_v24 = vld [vmem:[#allocation6 + $0x1d8] sm:$0xff]  }
  0x82   : > { %2439 = vmatprep.subr.bf16.mxu1 %v2746_v26  ;;  %v435_v16 = vld [vmem:[%s3171_s13 + $0x120] sm:$0xff]  ;;  %v436_v18 = vld [vmem:[%s3171_s13 + $0x128] sm:$0xff]  ;;  %v2772_v26 = vld [vmem:[#allocation6 + $0x198] sm:$0xff]  }
  0x83   : > { %v2259_v23 = vcombine.high %v431_v15, %v435_v16  ;;  %v2261_v25 = vcombine.high %v432_v17, %v436_v18  ;;  %v2258_v35 = vcombine.low %v431_v15, %v435_v16  ;;  %v2778_v40 = vld [vmem:[#allocation6 + $0x108] sm:$0xff]   ;;  %v2782_v49 = vld [vmem:[#allocation6 + $0x100] sm:$0xff]   ;;  %v410_v15 = vld [vmem:[%s3171_s13 + $0x58] sm:$0xff] }
  0x84   : > { %2376 = vmatpush3.bf16.msra.mxu0 %v2747_v27  ;;  %v439_v27 = vld [vmem:[%s3171_s13 + $0x140] sm:$0xff]  ;;  %v448_v45 = vld [vmem:[%s3171_s13 + $0x188] sm:$0xff]  ;;  %v414_v16 = vld [vmem:[%s3171_s13 + $0x78] sm:$0xff] }
  0x85   : > { %2440 = vmatpush3.bf16.msra.mxu1 %v2748_v28  ;;  %2377 = vmatprep.subr.bf16.mxu0 %v2749_v29  ;;  %v443_v28 = vld [vmem:[%s3171_s13 + $0x160] sm:$0xff]  ;;  %v2773_v29 = vld [vmem:[#allocation6 + $0x150] sm:$0xff]   ;;  %v452_v46 = vld [vmem:[%s3171_s13 + $0x1a8] sm:$0xff] }
  0x86   : > { %2441 = vmatprep.subr.bf16.mxu1 %v2750_v30  ;;  %v440_v30 = vld [vmem:[%s3171_s13 + $0x148] sm:$0xff]  ;;  %v2267_v37 = vcombine.high %v439_v27, %v443_v28  ;;  %v2266_v48 = vcombine.low %v439_v27, %v443_v28  ;;  %v2276_v60 = vcombine.low %v448_v45, %v452_v46  ;;  %v418_v27 = vld [vmem:[%s3171_s13 + $0x98] sm:$0xff] }
  0x87   : > { %v456_v57 = vld [vmem:[%s3171_s13 + $0x1c8] sm:$0xff]  ;;  %v422_v28 = vld [vmem:[%s3171_s13 + $0xb8] sm:$0xff] }
  0x88   : > { %2378 = vmatpush3.bf16.msra.mxu0 %v2751_v31  ;;  %v444_v31 = vld [vmem:[%s3171_s13 + $0x168] sm:$0xff] }
  0x89   : > { %2442 = vmatpush3.bf16.msra.mxu1 %v2752_v32  ;;  %2491 = vmatprep.subr.bf16.mxu0 %v2753_v41  ;;  %v2774_v32 = vld [vmem:[#allocation6 + $0x110] sm:$0xff]   ;;  %v2269_v38 = vcombine.high %v440_v30, %v444_v31  ;;  %v2779_v41 = vld [vmem:[#allocation6 + $0x1c8] sm:$0xff]  }
  0x8a   : > { %2555 = vmatprep.subr.bf16.mxu1 %v2755_v43  ;;  %v451_v43 = vld [vmem:[%s3171_s13 + $0x1a0] sm:$0xff]  ;;  %v460_v58 = vld [vmem:[%s3171_s13 + $0x1e8] sm:$0xff] }
  0x8b   : > { %1328 = vmatmul.mubr.bf16.vlgmr.msra.gmra.mxu0 %v2226_v36  ;;  %v2260_v36 = vcombine.low %v432_v17, %v436_v18  ;;  %v3242_v5 = vld [vmem:[%s3227_s16 + $0x8] sm:$0xff]  ;;  %v3262_v17 = vld [vmem:[%s3227_s16 + $0x30] sm:$0xff] }
  0x8c   : > { %1425 = vmatmul.mubr.bf16.vlgmr.msra.gmra.mxu1 %v2228_v39  ;;  %2492 = vmatpush3.bf16.msra.mxu0 %v2754_v42  ;;  %v2777_v39 = vld [vmem:[#allocation6 + $0x148] sm:$0xff]   ;;  %v447_v42 = vld [vmem:[%s3171_s13 + $0x180] sm:$0xff] }
  0x8d   : > { %2556 = vmatpush3.bf16.msra.mxu1 %v2756_v44  ;;  %1335 = vmatprep.mubr.bf16.mxu0 %v2235_v47  ;;  %v2780_v44 = vld [vmem:[#allocation6 + $0x188] sm:$0xff]   ;;  %v2781_v47 = vld [vmem:[#allocation6 + $0x140] sm:$0xff]   ;;  %v2274_v59 = vcombine.low %v447_v42, %v451_v43 }
  0x8e   : > { %1432 = vmatprep.mubr.bf16.mxu1 %v2237_v50  ;;  %2493 = vmatprep.subr.bf16.mxu0 %v2757_v51  ;;  %v2268_v50 = vcombine.low %v440_v30, %v444_v31  ;;  %v2275_v51 = vcombine.high %v447_v42, %v451_v43  ;;  %v3285_v31 = vld [vmem:[%s3227_s16 + $0x58] sm:$0xff] }
  0x8f   : > { %2557 = vmatprep.subr.bf16.mxu1 %v2759_v55  ;;  %v455_v55 = vld [vmem:[%s3171_s13 + $0x1c0] sm:$0xff]  ;;  %v3305_v43 = vld [vmem:[%s3227_s16 + $0x78] sm:$0xff] }
  0x90   : > { %2494 = vmatpush3.bf16.msra.mxu0 %v2758_v53  ;;  %v2277_v53 = vcombine.high %v448_v45, %v452_v46 }
  0x91   : > { %2558 = vmatpush3.bf16.msra.mxu1 %v2760_v56  ;;  %2495 = vmatprep.subr.bf16.mxu0 %v2761_v63  ;;  %v459_v56 = vld [vmem:[%s3171_s13 + $0x1e0] sm:$0xff] }
  0x92   : > { %2559 = vmatprep.subr.bf16.mxu1 %v2763_v1  ;;  %v3230_v63 = vld [vmem:[%s3227_s16] sm:$0xff]  ;;  %v401_v1 = vld [vmem:[%s3171_s13 + $0x10] sm:$0xff]  ;;  %v2282_v6 = vcombine.low %v455_v55, %v459_v56 }
  0x93   : > { %1336 = vmatmul.mubr.bf16.gmra.mxu0 %v2234_v52  ;;  %v2783_v52 = vld [vmem:[#allocation6 + $0x1c0] sm:$0xff]   ;;  %1753 = vperm.xlu0 %2717, %v3230_v63  }
  0x94   : > { %1433 = vmatmul.mubr.bf16.gmra.mxu1 %v2236_v54  ;;  %1343 = vmatprep.mubr.bf16.mxu0 %v2243_v61  ;;  %v2784_v54 = vld [vmem:[#allocation6 + $0x180] sm:$0xff]   ;;  %v2283_v61 = vcombine.high %v455_v55, %v459_v56  ;;  %v441_v56 = vld [vmem:[%s3171_s13 + $0x150] sm:$0xff] }
  0x95   : > { %1440 = vmatprep.mubr.bf16.mxu1 %v2245_v62  ;;  %2496 = vmatpush3.bf16.msra.mxu0 %v2762_v0  ;;  %v2285_v62 = vcombine.high %v456_v57, %v460_v58  ;;  %v3233_v0 = vld [vmem:[%s3227_s16 + $0x10] sm:$0xff] }
  0x96   : > { %2560 = vmatpush3.bf16.msra.mxu1 %v2764_v2  ;;  %2497 = vmatprep.subr.bf16.mxu0 %v2765_v11  ;;  %v405_v2 = vld [vmem:[%s3171_s13 + $0x30] sm:$0xff]  ;;  %v3250_v11 = vld [vmem:[%s3227_s16 + $0x20] sm:$0xff] }
  0x97   : > { %2561 = vmatprep.subr.bf16.mxu1 %v2767_v13  ;;  %1763 = vperm.xlu1 %2718, %v3233_v0   ;;  %v2231_v9 = vcombine.high %v401_v1, %v405_v2  ;;  %v409_v13 = vld [vmem:[%s3171_s13 + $0x50] sm:$0xff]  ;;  %v2230_v18 = vcombine.low %v401_v1, %v405_v2  ;;  %v450_v2 = vld [vmem:[%s3171_s13 + $0x198] sm:$0xff] }
  0x98   : > { %1758 = vperm.xlu0 %2717, %v3242_v5   ;;  %v453_v1 = vld [vmem:[%s3171_s13 + $0x1b0] sm:$0xff] }
  0x99   : > { %2498 = vmatpush3.bf16.msra.mxu0 %v2766_v12  ;;  %v3253_v12 = vld [vmem:[%s3227_s16 + $0x28] sm:$0xff] }
  0x9a   : > { %2562 = vmatpush3.bf16.msra.mxu1 %v2768_v14  ;;  %2499 = vmatprep.subr.bf16.mxu0 %v2769_v19  ;;  %v413_v14 = vld [vmem:[%s3171_s13 + $0x70] sm:$0xff]  ;;  %v3265_v19 = vld [vmem:[%s3227_s16 + $0x38] sm:$0xff] }
  0x9b   : > { %1344 = vmatmul.mubr.bf16.gmra.mxu0 %v2242_v3  ;;  %2563 = vmatprep.subr.bf16.mxu1 %v2771_v24  ;;  %v402_v3 = vld [vmem:[%s3171_s13 + $0x18] sm:$0xff]  ;;  %v3273_v24 = vld [vmem:[%s3227_s16 + $0x48] sm:$0xff]  ;;  %v2238_v30 = vcombine.low %v409_v13, %v413_v14 }
  0x9c   : > { %1441 = vmatmul.mubr.bf16.gmra.mxu1 %v2244_v7  ;;  %1351 = vmatprep.mubr.bf16.mxu0 %v2251_v8  ;;  %v3245_v7 = vld [vmem:[%s3227_s16 + $0x18] sm:$0xff]  ;;  %v2284_v8 = vcombine.low %v456_v57, %v460_v58  ;;  %v445_v57 = vld [vmem:[%s3171_s13 + $0x170] sm:$0xff] }
  0x9d   : > { %1448 = vmatprep.mubr.bf16.mxu1 %v2253_v10  ;;  %2500 = vmatpush3.bf16.msra.mxu0 %v2770_v21  ;;  %v2233_v10 = vcombine.high %v402_v3, %v406_v4  ;;  %v2239_v21 = vcombine.high %v409_v13, %v413_v14  ;;  %v442_v58 = vld [vmem:[%s3171_s13 + $0x158] sm:$0xff] }
  0x9e   : > { %2564 = vmatpush3.bf16.msra.mxu1 %v2772_v26  ;;  %2501 = vmatprep.subr.bf16.mxu0 %v2773_v29  ;;  %v421_v26 = vld [vmem:[%s3171_s13 + $0xb0] sm:$0xff] }
  0x9f   : > { %2565 = vmatprep.subr.bf16.mxu1 %v2775_v33  ;;  %1768 = vperm.xlu1 %2718, %v3245_v7   ;;  %v3282_v29 = vld [vmem:[%s3227_s16 + $0x50] sm:$0xff] }
  0xa0   : > { %1773 = vperm.xlu0 %2717, %v3250_v11  }
  0xa1   : > { %2502 = vmatpush3.bf16.msra.mxu0 %v2774_v32  ;;  %v2240_v32 = vcombine.low %v410_v15, %v414_v16 }
  0xa2   : > { %2566 = vmatpush3.bf16.msra.mxu1 %v2776_v34  ;;  %2503 = vmatprep.subr.bf16.mxu0 %v2777_v39  ;;  %v2249_v34 = vcombine.high %v418_v27, %v422_v28  ;;  %v426_v39 = vld [vmem:[%s3171_s13 + $0xd8] sm:$0xff] }
  0xa3   : > { %1352 = vmatmul.mubr.bf16.gmra.mxu0 %v2250_v20  ;;  %2567 = vmatprep.subr.bf16.mxu1 %v2779_v41  ;;  %v2232_v20 = vcombine.low %v402_v3, %v406_v4  ;;  %v3302_v41 = vld [vmem:[%s3227_s16 + $0x70] sm:$0xff]  ;;  %v454_v3 = vld [vmem:[%s3171_s13 + $0x1b8] sm:$0xff]  ;;  %v2270_v4 = vcombine.low %v441_v56, %v445_v57 }
  0xa4   : > { %1449 = vmatmul.mubr.bf16.gmra.mxu1 %v2252_v22  ;;  %1359 = vmatprep.mubr.bf16.mxu0 %v2259_v23  ;;  %v2241_v22 = vcombine.high %v410_v15, %v414_v16  ;;  %v3270_v23 = vld [vmem:[%s3227_s16 + $0x40] sm:$0xff]  ;;  %v2280_v13 = vcombine.low %v450_v2, %v454_v3 }
  0xa5   : > { %1456 = vmatprep.mubr.bf16.mxu1 %v2261_v25  ;;  %2504 = vmatpush3.bf16.msra.mxu0 %v2778_v40  ;;  %v417_v25 = vld [vmem:[%s3171_s13 + $0x90] sm:$0xff]  ;;  %v430_v40 = vld [vmem:[%s3171_s13 + $0xf8] sm:$0xff] }
  0xa6   : > { %2568 = vmatpush3.bf16.msra.mxu1 %v2780_v44  ;;  %2505 = vmatprep.subr.bf16.mxu0 %v2781_v47  ;;  %v2247_v33 = vcombine.high %v417_v25, %v421_v26  ;;  %v2246_v42 = vcombine.low %v417_v25, %v421_v26  ;;  %v2248_v44 = vcombine.low %v418_v27, %v422_v28  ;;  %v433_v47 = vld [vmem:[%s3171_s13 + $0x110] sm:$0xff] }
  0xa7   : > { %2569 = vmatprep.subr.bf16.mxu1 %v2783_v52  ;;  %1778 = vperm.xlu1 %2718, %v3253_v12   ;;  %v2257_v46 = vcombine.high %v426_v39, %v430_v40 }
  0xa8   : > { %1783 = vperm.xlu0 %2717, %v3262_v17  }
  0xa9   : > { %2506 = vmatpush3.bf16.msra.mxu0 %v2782_v49  ;;  %v2994_v49 = vmov 1  }
  0xaa   : > { %2570 = vmatpush3.bf16.msra.mxu1 %v2784_v54 }
  0xab   : > { %1360 = vmatmul.mubr.bf16.gmra.mxu0 %v2258_v35  ;;  %1788 = vperm.xlu1 %2718, %v3265_v19   ;;  %v3290_v35 = vld [vmem:[%s3227_s16 + $0x60] sm:$0xff] }
  0xac   : > { %1457 = vmatmul.mubr.bf16.gmra.mxu1 %v2260_v36  ;;  %1367 = vmatprep.mubr.bf16.mxu0 %v2267_v37  ;;  %v3293_v36 = vld [vmem:[%s3227_s16 + $0x68] sm:$0xff]  ;;  %v425_v37 = vld [vmem:[%s3171_s13 + $0xd0] sm:$0xff] }
  0xad   : > { %1464 = vmatprep.mubr.bf16.mxu1 %v2269_v38  ;;  %1793 = vperm.xlu0 %2717, %v3270_v23   ;;  %v429_v38 = vld [vmem:[%s3171_s13 + $0xf0] sm:$0xff] }
  0xae   : > { %v2255_v45 = vcombine.high %v425_v37, %v429_v38  ;;  %v2254_v52 = vcombine.low %v425_v37, %v429_v38 }
  0xaf   : > { %1798 = vperm.xlu1 %2718, %v3273_v24  }
  0xb1   : > { %1803 = vperm.xlu0 %2717, %v3282_v29  }
  0xb3   : > { %1368 = vmatmul.mubr.bf16.gmra.mxu0 %v2266_v48  ;;  %1808 = vperm.xlu1 %2718, %v3285_v31   ;;  %v437_v48 = vld [vmem:[%s3171_s13 + $0x130] sm:$0xff] }
  0xb4   : > { %1465 = vmatmul.mubr.bf16.gmra.mxu1 %v2268_v50  ;;  %1375 = vmatprep.mubr.bf16.mxu0 %v2275_v51  ;;  %v434_v50 = vld [vmem:[%s3171_s13 + $0x118] sm:$0xff]  ;;  %v2263_v54 = vcombine.high %v433_v47, %v437_v48 }
  0xb5   : > { %1472 = vmatprep.mubr.bf16.mxu1 %v2277_v53  ;;  %1813 = vperm.xlu0 %2717, %v3290_v35   ;;  %v438_v51 = vld [vmem:[%s3171_s13 + $0x138] sm:$0xff]  ;;  %v2256_v53 = vcombine.low %v426_v39, %v430_v40 }
  0xb6   : > { %v2265_v55 = vcombine.high %v434_v50, %v438_v51 }
  0xb7   : > { %1818 = vperm.xlu1 %2718, %v3293_v36  }
  0xb9   : > { %1823 = vperm.xlu0 %2717, %v3302_v41  }
  0xbb   : > { %1376 = vmatmul.mubr.bf16.gmra.mxu0 %v2274_v59  ;;  %1828 = vperm.xlu1 %2718, %v3305_v43   ;;  %v446_v59 = vld [vmem:[%s3171_s13 + $0x178] sm:$0xff] }
  0xbc   : > { %1473 = vmatmul.mubr.bf16.gmra.mxu1 %v2276_v60  ;;  %1383 = vmatprep.mubr.bf16.mxu0 %v2283_v61  ;;  %v2262_v60 = vcombine.low %v433_v47, %v437_v48  ;;  %v2264_v61 = vcombine.low %v434_v50, %v438_v51 }
  0xbd   : > { %1480 = vmatprep.mubr.bf16.mxu1 %v2285_v62  ;;  %2719 = vset.pattern.permute.xlu0 %v2994_v49  ;;  %v2271_v62 = vcombine.high %v441_v56, %v445_v57 }
  0xbe   : > { %1868 = vperm.xlu0 %2719, %v3230_v63   ;;  %v2273_v63 = vcombine.high %v442_v58, %v446_v59 }
  0xbf   : > { %2720 = vset.pattern.permute.xlu1 %v2994_v49 }
  0xc0   : > { %1872 = vperm.xlu1 %2720, %v3242_v5   ;;  %v2272_v5 = vcombine.low %v442_v58, %v446_v59 }
  0xc2   : > { %1880 = vperm.xlu0 %2719, %v3245_v7   ;;  %v2281_v7 = vcombine.high %v450_v2, %v454_v3 }
  0xc3   : > { %1384 = vmatmul.mubr.bf16.gmra.mxu0 %v2282_v6 }
  0xc4   : > { %1481 = vmatmul.mubr.bf16.gmra.mxu1 %v2284_v8  ;;  %1521 = vmatprep.mubr.bf16.mxu0 %v2231_v9  ;;  %v457_v8 = vld [vmem:[%s3171_s13 + $0x1d0] sm:$0xff] }
  0xc5   : > { %1618 = vmatprep.mubr.bf16.mxu1 %v2233_v10  ;;  %1876 = vperm.xlu1 %2720, %v3233_v0   ;;  %v449_v0 = vld [vmem:[%s3171_s13 + $0x190] sm:$0xff]  ;;  %v458_v10 = vld [vmem:[%s3171_s13 + $0x1d8] sm:$0xff] }
  0xc6   : > { %1888 = vperm.xlu0 %2719, %v3253_v12   ;;  %v2279_v6 = vcombine.high %v449_v0, %v453_v1  ;;  %v461_v9 = vld [vmem:[%s3171_s13 + $0x1f0] sm:$0xff]  ;;  %v2278_v12 = vcombine.low %v449_v0, %v453_v1 }
  0xc7   : > { %v2287_v14 = vcombine.high %v457_v8, %v461_v9  ;;  %v2286_v16 = vcombine.low %v457_v8, %v461_v9 }
  0xc9   : > { %1884 = vperm.xlu1 %2720, %v3250_v11   ;;  %v462_v11 = vld [vmem:[%s3171_s13 + $0x1f8] sm:$0xff] }
  0xca   : > { %1896 = vperm.xlu0 %2719, %v3265_v19   ;;  %v2289_v15 = vcombine.high %v458_v10, %v462_v11 }
  0xcb   : > { %1522 = vmatmul.mubr.bf16.vlgmr.msra.gmra.mxu0 %v2230_v18 }
  0xcc   : > { %1619 = vmatmul.mubr.bf16.vlgmr.msra.gmra.mxu1 %v2232_v20  ;;  %1529 = vmatprep.mubr.bf16.mxu0 %v2239_v21 }
  0xcd   : > { %1626 = vmatprep.mubr.bf16.mxu1 %v2241_v22  ;;  %1892 = vperm.xlu1 %2720, %v3262_v17   ;;  %v2288_v17 = vcombine.low %v458_v10, %v462_v11 }
  0xce   : > { %1904 = vperm.xlu0 %2719, %v3273_v24  }
  0xd1   : > { %1900 = vperm.xlu1 %2720, %v3270_v23  }
  0xd2   : > { %1912 = vperm.xlu0 %2719, %v3285_v31  }
  0xd3   : > { %1530 = vmatmul.mubr.bf16.gmra.mxu0 %v2238_v30 }
  0xd4   : > { %1627 = vmatmul.mubr.bf16.gmra.mxu1 %v2240_v32  ;;  %1537 = vmatprep.mubr.bf16.mxu0 %v2247_v33 }
  0xd5   : > { %1634 = vmatprep.mubr.bf16.mxu1 %v2249_v34  ;;  %1908 = vperm.xlu1 %2720, %v3282_v29  }
  0xd6   : > { %1920 = vperm.xlu0 %2719, %v3293_v36  }
  0xd9   : > { %1916 = vperm.xlu1 %2720, %v3290_v35  }
  0xda   : > { %1928 = vperm.xlu0 %2719, %v3305_v43  }
  0xdb   : > { %1538 = vmatmul.mubr.bf16.gmra.mxu0 %v2246_v42 }
  0xdc   : > { %1635 = vmatmul.mubr.bf16.gmra.mxu1 %v2248_v44  ;;  %1545 = vmatprep.mubr.bf16.mxu0 %v2255_v45 }
  0xdd   : > { %1642 = vmatprep.mubr.bf16.mxu1 %v2257_v46  ;;  %1924 = vperm.xlu1 %2720, %v3302_v41  }
  0xe3   : > { %1546 = vmatmul.mubr.bf16.gmra.mxu0 %v2254_v52 }
  0xe4   : > { %1643 = vmatmul.mubr.bf16.gmra.mxu1 %v2256_v53  ;;  %1553 = vmatprep.mubr.bf16.mxu0 %v2263_v54 }
  0xe5   : > { %1650 = vmatprep.mubr.bf16.mxu1 %v2265_v55 }
  0xeb   : > { %1554 = vmatmul.mubr.bf16.gmra.mxu0 %v2262_v60 }
  0xec   : > { %1651 = vmatmul.mubr.bf16.gmra.mxu1 %v2264_v61  ;;  %1561 = vmatprep.mubr.bf16.mxu0 %v2271_v62 }
  0xed   : > { %1658 = vmatprep.mubr.bf16.mxu1 %v2273_v63 }
  0xf3   : > { %1562 = vmatmul.mubr.bf16.gmra.mxu0 %v2270_v4 }
  0xf4   : > { %1659 = vmatmul.mubr.bf16.gmra.mxu1 %v2272_v5  ;;  %1569 = vmatprep.mubr.bf16.mxu0 %v2279_v6 }
  0xf5   : > { %1666 = vmatprep.mubr.bf16.mxu1 %v2281_v7 }
  0xfb   : > { %1570 = vmatmul.mubr.bf16.gmra.mxu0 %v2278_v12 }
  0xfc   : > { %1667 = vmatmul.mubr.bf16.gmra.mxu1 %v2280_v13  ;;  %1577 = vmatprep.mubr.bf16.mxu0 %v2287_v14 }
  0xfd   : > { %1674 = vmatprep.mubr.bf16.mxu1 %v2289_v15 }
 0x103   : > { %1578 = vmatmul.mubr.bf16.gmra.mxu0 %v2286_v16 }
 0x104   : > { %1675 = vmatmul.mubr.bf16.gmra.mxu1 %v2288_v17 }
 0x10e   : > { %v3395_v45 = vpop.permute.xlu0 %1753 }
 0x112   : > { %v3403_v49 = vpop.permute.xlu1 %1763 }
 0x113   : > { %v3411_v53 = vpop.permute.xlu0 %1758 }
 0x11a   : > { %v3419_v57 = vpop.permute.xlu1 %1768 }
 0x11b   : > { %v3427_v61 = vpop.permute.xlu0 %1773 }
 0x122   : > { %v3435_v1 = vpop.permute.xlu1 %1778 }
 0x123   : > { %v3443_v5 = vpop.permute.xlu0 %1783 }
 0x126   : > { %v3451_v9 = vpop.permute.xlu1 %1788 }
 0x127   : > { %3764 = vst [vmem:[#allocation27_spill] sm:$0xff] %v3451_v9 }
 0x128   : > { %v3459_v13 = vpop.permute.xlu0 %1793 }
 0x129   : > { %3768 = vst [vmem:[#allocation31_spill] sm:$0xff] %v3459_v13 }
 0x12a   : > { %v3467_v17 = vpop.permute.xlu1 %1798 }
 0x12b   : > { %3772 = vst [vmem:[#allocation35_spill] sm:$0xff] %v3467_v17 }
 0x14b   : > { %v3341_v18 = vpop.f32.mrf.mxu0 }
 0x14c   : > { %v3343_v19 = vpop.f32.mrf.mxu1 }
 0x14d   : > { %v3345_v20 = vpop.f32.mrf.mxu0 }
 0x14e   : > { %v3347_v21 = vpop.f32.mrf.mxu1 }
 0x14f   : > { %v3349_v22 = vpop.f32.mrf.mxu0 }
 0x150   : > { %v3351_v23 = vpop.f32.mrf.mxu1 }
 0x151   : > { %v3353_v24 = vpop.f32.mrf.mxu0 }
 0x152   : > { %v3355_v25 = vpop.f32.mrf.mxu1 }
 0x153   : > { %v3357_v26 = vpop.f32.mrf.mxu0 }
 0x154   : > { %v3359_v27 = vpop.f32.mrf.mxu1 }
 0x155   : > { %v3361_v28 = vpop.f32.mrf.mxu0 }
 0x156   : > { %v3363_v29 = vpop.f32.mrf.mxu1 }
 0x157   : > { %v3365_v30 = vpop.f32.mrf.mxu0 }
 0x158   : > { %v3367_v31 = vpop.f32.mrf.mxu1 }
 0x159   : > { %v3369_v32 = vpop.f32.mrf.mxu0 }
 0x15a   : > { %v3371_v33 = vpop.f32.mrf.mxu1 }
 0x15b   : > { %v3373_v34 = vpop.f32.mrf.mxu0 }
 0x15c   : > { %v3375_v35 = vpop.f32.mrf.mxu1 }
 0x15d   : > { %v3377_v36 = vpop.f32.mrf.mxu0 }
 0x15e   : > { %v3379_v37 = vpop.f32.mrf.mxu1 }
 0x15f   : > { %v3381_v38 = vpop.f32.mrf.mxu0 }
 0x160   : > { %v3383_v39 = vpop.f32.mrf.mxu1 }
 0x161   : > { %v3385_v40 = vpop.f32.mrf.mxu0 }
 0x162   : > { %v3387_v41 = vpop.f32.mrf.mxu1 }
 0x163   : > { %v3389_v42 = vpop.f32.mrf.mxu0 }
 0x164   : > { %v3391_v43 = vpop.f32.mrf.mxu1 }
 0x165   : > { %v3393_v44 = vpop.f32.mrf.mxu0 }
 0x166   : > { %v3397_v46 = vpop.f32.mrf.mxu1 }
 0x167   : > { %v3399_v47 = vpop.f32.mrf.mxu0 }
 0x168   : > { %v3401_v48 = vpop.f32.mrf.mxu1 }
 0x169   : > { %v3405_v50 = vpop.f32.mrf.mxu0 }
 0x16a   : > { %v3407_v51 = vpop.f32.mrf.mxu1 }
 0x16b   : > { %v3409_v52 = vpop.f32.mrf.mxu0 }
 0x16c   : > { %v3413_v54 = vpop.f32.mrf.mxu1 }
 0x16d   : > { %v3415_v55 = vpop.f32.mrf.mxu0 }
 0x16e   : > { %v3417_v56 = vpop.f32.mrf.mxu1 }
 0x16f   : > { %v3421_v58 = vpop.f32.mrf.mxu0 }
 0x170   : > { %v3423_v59 = vpop.f32.mrf.mxu1 }
 0x171   : > { %v3425_v60 = vpop.f32.mrf.mxu0 }
 0x172   : > { %v3429_v62 = vpop.f32.mrf.mxu1 }
 0x173   : > { %v3431_v63 = vpop.f32.mrf.mxu0 }
 0x174   : > { %3756 = vst [vmem:[#allocation19_spill] sm:$0xff] %v3431_v63  ;;  %v3433_v0 = vpop.f32.mrf.mxu1 }
 0x175   : > { %3757 = vst [vmem:[#allocation20_spill] sm:$0xff] %v3433_v0  ;;  %v3437_v2 = vpop.f32.mrf.mxu0 }
 0x176   : > { %3758 = vst [vmem:[#allocation21_spill] sm:$0xff] %v3437_v2  ;;  %v3439_v3 = vpop.f32.mrf.mxu1 }
 0x177   : > { %3759 = vst [vmem:[#allocation22_spill] sm:$0xff] %v3439_v3  ;;  %v3441_v4 = vpop.f32.mrf.mxu0 }
 0x178   : > { %3760 = vst [vmem:[#allocation23_spill] sm:$0xff] %v3441_v4  ;;  %v3445_v6 = vpop.f32.mrf.mxu1  ;;  %v1847_v4 = vlaneseq }
 0x179   : > { %3761 = vst [vmem:[#allocation24_spill] sm:$0xff] %v3445_v6  ;;  %v3447_v7 = vpop.f32.mrf.mxu0 }
 0x17a   : > { %3762 = vst [vmem:[#allocation25_spill] sm:$0xff] %v3447_v7  ;;  %v3449_v8 = vpop.f32.mrf.mxu1 }
 0x17b   : > { %3763 = vst [vmem:[#allocation26_spill] sm:$0xff] %v3449_v8  ;;  %v3453_v10 = vpop.f32.mrf.mxu0 }
 0x17c   : > { %3765 = vst [vmem:[#allocation28_spill] sm:$0xff] %v3453_v10  ;;  %v3455_v11 = vpop.f32.mrf.mxu1  ;;  %v3475_v10 = vpop.permute.xlu0 %1803 }
 0x17d   : > { %3766 = vst [vmem:[#allocation29_spill] sm:$0xff] %v3455_v11  ;;  %v3457_v12 = vpop.f32.mrf.mxu0  ;;  %3776 = vst [vmem:[#allocation39_spill] sm:$0xff] %v3475_v10  ;;  %v2381_v10 = vadd.f32 %v3345_v20, %v3341_v18  ;;  %v1734_v20 = vld [vmem:[#allocation8] sm:$0xff] }
 0x17e   : > { %3767 = vst [vmem:[#allocation30_spill] sm:$0xff] %v3457_v12  ;;  %v3461_v14 = vpop.f32.mrf.mxu1 }
 0x17f   : > { %3769 = vst [vmem:[#allocation32_spill] sm:$0xff] %v3461_v14  ;;  %v3463_v15 = vpop.f32.mrf.mxu0 }
 0x180   : > { %3770 = vst [vmem:[#allocation33_spill] sm:$0xff] %v3463_v15  ;;  %v3465_v16 = vpop.f32.mrf.mxu1  ;;  %v3483_v15 = vpop.permute.xlu1 %1808 }
 0x181   : > { %3771 = vst [vmem:[#allocation34_spill] sm:$0xff] %v3465_v16  ;;  %v3469_v6 = vpop.f32.mrf.mxu0  ;;  %3780 = vst [vmem:[#allocation43_spill] sm:$0xff] %v3483_v15 }
 0x182   : > { %3773 = vst [vmem:[#allocation36_spill] sm:$0xff] %v3469_v6  ;;  %v3471_v8 = vpop.f32.mrf.mxu1 }
 0x183   : > { %3774 = vst [vmem:[#allocation37_spill] sm:$0xff] %v3471_v8  ;;  %v3473_v7 = vpop.f32.mrf.mxu0  ;;  %v3491_v8 = vpop.permute.xlu0 %1813 }
 0x184   : > { %3775 = vst [vmem:[#allocation38_spill] sm:$0xff] %v3473_v7  ;;  %v3477_v11 = vpop.f32.mrf.mxu1  ;;  %3784 = vst [vmem:[#allocation47_spill] sm:$0xff] %v3491_v8  ;;  %v1848_v7 = vshrl.u32 %v1847_v4, 7  ;;  %v3499_v15 = vpop.permute.xlu1 %1818 }
 0x185   : > { %3777 = vst [vmem:[#allocation40_spill] sm:$0xff] %v3477_v11  ;;  %v3479_v12 = vpop.f32.mrf.mxu0  ;;  %v2445_v11 = vadd.f32 %v3347_v21, %v3343_v19  ;;  %3786 = vst [vmem:[#allocation49_spill] sm:$0xff] %v3499_v15 }
 0x186   : > { %3778 = vst [vmem:[#allocation41_spill] sm:$0xff] %v3479_v12  ;;  %v3481_v14 = vpop.f32.mrf.mxu1  ;;  %v1849_v4 = vsub.s32 0, %v1848_v7 }
 0x187   : > { %3779 = vst [vmem:[#allocation42_spill] sm:$0xff] %v3481_v14  ;;  %v3485_v16 = vpop.f32.mrf.mxu0  ;;  %v3505_v19 = vpop.permute.xlu0 %1823 }
 0x188   : > { %3781 = vst [vmem:[#allocation44_spill] sm:$0xff] %v3485_v16  ;;  %v3487_v17 = vpop.f32.mrf.mxu1  ;;  %v1427_v16 = vadd.f32 %v2445_v11, %v2381_v10  ;;  %v3507_v63 = vrot.slane %v1734_v20, %v1849_v4  ;;  %v3513_v11 = vpop.permute.xlu1 %1828  ;;  %v2390_v4 = vadd.f32 %v3369_v32, %v3365_v30 }
 0x189   : > { %3782 = vst [vmem:[#allocation45_spill] sm:$0xff] %v3487_v17  ;;  %v3489_v6 = vpop.f32.mrf.mxu0  ;;  %v2384_v17 = vadd.f32 %v3353_v24, %v3349_v22  ;;  %v1949_v22 = vsub.s32 1, %v1848_v7  ;;  %v2451_v24 = vadd.f32 %v3363_v29, %v3359_v27 }
 0x18a   : > { %3783 = vst [vmem:[#allocation46_spill] sm:$0xff] %v3489_v6  ;;  %v3497_v12 = vpop.f32.mrf.mxu1  ;;  %v2448_v6 = vadd.f32 %v3355_v25, %v3351_v23  ;;  %v2387_v23 = vadd.f32 %v3361_v28, %v3357_v26  ;;  %v2454_v26 = vadd.f32 %v3371_v33, %v3367_v31 }
 0x18b   : > { %3785 = vst [vmem:[#allocation48_spill] sm:$0xff] %v3497_v12  ;;  %v2507_v14 = vpop.f32.mrf.mxu0  ;;  %v3520_v27 = vrot.slane %v1734_v20, %v1949_v22  ;;  %v1869_v29 = vpop.permute.xlu0 %1868  ;;  %v2393_v22 = vadd.f32 %v3377_v36, %v3373_v34 }
 0x18c   : > { %v2571_v13 = vpop.f32.mrf.mxu1  ;;  %v1430_v2 = vadd.f32 %v2448_v6, %v2384_v17  ;;  %v1873_v32 = vpop.permute.xlu1 %1872  ;;  %v1438_v33 = vadd.f32 %v2454_v26, %v2390_v4  ;;  %v2003_v26 = vld [vmem:[%s3185_s12] sm:$0xff] }
 0x18d   : > { %v2508_v8 = vpop.f32.mrf.mxu0 }
 0x18e   : > { %v2509_v9 = vadd.f32 %v2508_v8, %v2507_v14  ;;  %v2572_v18 = vpop.f32.mrf.mxu1 }
 0x18f   : > { %v2510_v3 = vpop.f32.mrf.mxu0  ;;  %v2573_v12 = vadd.f32 %v2572_v18, %v2571_v13 }
 0x190   : > { %v1524_v21 = vadd.f32 %v2509_v9, %v1427_v16  ;;  %v2574_v0 = vpop.f32.mrf.mxu1  ;;  %v1969_v9 = vsub.s32 2, %v1848_v7 }
 0x191   : > { %v2511_v15 = vpop.f32.mrf.mxu0 }
 0x192   : > { %v1621_v25 = vadd.f32 %v2573_v12, %v1524_v21  ;;  %v2512_v8 = vadd.f32 %v2511_v15, %v2510_v3  ;;  %v2575_v10 = vpop.f32.mrf.mxu1  ;;  %v1435_v3 = vadd.f32 %v2451_v24, %v2387_v23  ;;  %v2457_v23 = vadd.f32 %v3379_v37, %v3375_v35 }
 0x193   : > { %v2513_v14 = vpop.f32.mrf.mxu0  ;;  %v2576_v16 = vadd.f32 %v2575_v10, %v2574_v0  ;;  %v3523_v0 = vrot.slane %v1734_v20, %v1969_v9  ;;  %v2396_v35 = vadd.f32 %v3385_v40, %v3381_v38  ;;  %v2460_v37 = vadd.f32 %v3387_v41, %v3383_v39 }
 0x194   : > { %v1527_v13 = vadd.f32 %v2512_v8, %v1430_v2  ;;  %v2577_v6 = vpop.f32.mrf.mxu1  ;;  %v1831_v17 = vmul.f32 %v3395_v45, %v1621_v25  ;;  %v1443_v36 = vadd.f32 %v2457_v23, %v2393_v22 }
 0x195   : > { %v2514_v28 = vpop.f32.mrf.mxu0 }
 0x196   : > { %v1624_v12 = vadd.f32 %v2576_v16, %v1527_v13  ;;  %v2515_v15 = vadd.f32 %v2514_v28, %v2513_v14  ;;  %v2578_v18 = vpop.f32.mrf.mxu1  ;;  %v1851_v2 = vadd.f32 %v3507_v63, %v1831_v17 }
 0x197   : > { %v2516_v7 = vpop.f32.mrf.mxu0  ;;  %v2579_v21 = vadd.f32 %v2578_v18, %v2577_v6 }
 0x198   : > { %v1532_v45 = vadd.f32 %v2515_v15, %v1435_v3  ;;  %v1931_v25 = vmul.f32 %v1869_v29, %v1851_v2  ;;  %v2580_v30 = vpop.f32.mrf.mxu1  ;;  %v1832_v31 = vmul.f32 %v3411_v53, %v1624_v12  ;;  %v1877_v2 = vpop.permute.xlu1 %1876 }
 0x199   : > { %v2517_v24 = vpop.f32.mrf.mxu0 }
 0x19a   : > { %v1629_v8 = vadd.f32 %v2579_v21, %v1532_v45  ;;  %v1951_v20 = vmul.f32 %v3520_v27, %v1931_v25  ;;  %v2518_v10 = vadd.f32 %v2517_v24, %v2516_v7  ;;  %v2581_v14 = vpop.f32.mrf.mxu1  ;;  %v1852_v9 = vadd.f32 %v3507_v63, %v1832_v31  ;;  %v2004_v31 = vld [vmem:[%s3185_s12 + $0x8] sm:$0xff] }
 0x19b   : > { %v2582_v13 = vadd.f32 %v2581_v14, %v2580_v30  ;;  %v2519_v16 = vpop.f32.mrf.mxu0  ;;  %v1446_v25 = vadd.f32 %v2460_v37, %v2396_v35  ;;  %v2399_v30 = vadd.f32 %v3393_v44, %v3389_v42  ;;  %v1881_v44 = vpop.permute.xlu0 %1880 }
 0x19c   : > { %v1971_v53 = vadd.f32 %v3523_v0, %v1951_v20  ;;  %v1535_v6 = vadd.f32 %v2518_v10, %v1438_v33  ;;  %v1932_v17 = vmul.f32 %v1873_v32, %v1852_v9  ;;  %v2583_v4 = vpop.f32.mrf.mxu1  ;;  %v1833_v34 = vmul.f32 %v3403_v49, %v1629_v8 }
 0x19d   : > { %v2520_v28 = vpop.f32.mrf.mxu0  ;;  %v2463_v32 = vadd.f32 %v3397_v46, %v3391_v43 }
 0x19e   : > { %v1987_v29 = vmax.f32 %v1971_v53, 0.0  ;;  %v1632_v3 = vadd.f32 %v2582_v13, %v1535_v6  ;;  %v1952_v12 = vmul.f32 %v3520_v27, %v1932_v17  ;;  %v2521_v15 = vadd.f32 %v2520_v28, %v2519_v16  ;;  %v2584_v18 = vpop.f32.mrf.mxu1 }
 0x19f   : > { %v2585_v7 = vadd.f32 %v2584_v18, %v2583_v4  ;;  %v1853_v49 = vadd.f32 %v3507_v63, %v1833_v34  ;;  %v2522_v45 = vpop.f32.mrf.mxu0  ;;  %v1451_v53 = vadd.f32 %v2463_v32, %v2399_v30  ;;  %v2402_v6 = vadd.f32 %v3405_v50, %v3399_v47  ;;  %v1885_v50 = vpop.permute.xlu1 %1884 }
 0x1a0   : > { %v2019_v21 = vadd.f32 %v2003_v26, %v1987_v29  ;;  %v1972_v38 = vadd.f32 %v3523_v0, %v1952_v12  ;;  %v1540_v40 = vadd.f32 %v2521_v15, %v1443_v36  ;;  %v2586_v39 = vpop.f32.mrf.mxu1  ;;  %v1834_v41 = vmul.f32 %v3419_v57, %v1632_v3  ;;  %v2005_v36 = vld [vmem:[%s3185_s12 + $0x10] sm:$0xff] }
 0x1a1   : > { %v1933_v33 = vmul.f32 %v1877_v2, %v1853_v49  ;;  %v2523_v22 = vpop.f32.mrf.mxu0  ;;  %v2466_v17 = vadd.f32 %v3407_v51, %v3401_v48  ;;  %v2405_v29 = vadd.f32 %v3415_v55, %v3409_v52  ;;  %v2469_v47 = vadd.f32 %v3417_v56, %v3413_v54 }
 0x1a2   : > { %2035 = vst [vmem:[%s3550_s17] sm:$0xff] %v2019_v21  ;;  %v1988_v23 = vmax.f32 %v1972_v38, 0.0  ;;  %v1637_v24 = vadd.f32 %v2585_v7, %v1540_v40  ;;  %v1854_v8 = vadd.f32 %v3507_v63, %v1834_v41  ;;  %v2524_v57 = vadd.f32 %v2523_v22, %v2522_v45  ;;  %v2587_v20 = vpop.f32.mrf.mxu1  ;;  %v2006_v45 = vld [vmem:[%s3185_s12 + $0x18] sm:$0xff]  ;;  %v1889_v41 = vpop.permute.xlu0 %1888 }
 0x1a3   : > { %v1953_v42 = vmul.f32 %v3520_v27, %v1933_v33  ;;  %v2588_v43 = vadd.f32 %v2587_v20, %v2586_v39  ;;  %v2525_v46 = vpop.f32.mrf.mxu0  ;;  %v1454_v40 = vadd.f32 %v2466_v17, %v2402_v6  ;;  %v1459_v39 = vadd.f32 %v2469_v47, %v2405_v29  ;;  %v3787_v17 = vld [vmem:[#allocation19_spill] sm:$0xff] }
 0x1a4   : > { %v2020_v10 = vadd.f32 %v2004_v31, %v1988_v23  ;;  %v1934_v14 = vmul.f32 %v1881_v44, %v1854_v8  ;;  %v1543_v9 = vadd.f32 %v2524_v57, %v1446_v25  ;;  %v2589_v13 = vpop.f32.mrf.mxu1  ;;  %v1835_v16 = vmul.f32 %v3427_v61, %v1637_v24  ;;  %v2007_v8 = vld [vmem:[%s3185_s12 + $0x20] sm:$0xff] }
 0x1a5   : > { %v1973_v4 = vadd.f32 %v3523_v0, %v1953_v42  ;;  %v2526_v34 = vpop.f32.mrf.mxu0  ;;  %v2408_v23 = vadd.f32 %v3425_v60, %v3421_v58  ;;  %v2472_v24 = vadd.f32 %v3429_v62, %v3423_v59 }
 0x1a6   : > { %2036 = vst [vmem:[%s3550_s17 + $0x8] sm:$0xff] %v2020_v10  ;;  %v1954_v35 = vmul.f32 %v3520_v27, %v1934_v14  ;;  %v1640_v37 = vadd.f32 %v2588_v43, %v1543_v9  ;;  %v1855_v26 = vadd.f32 %v3507_v63, %v1835_v16  ;;  %v2527_v28 = vadd.f32 %v2526_v34, %v2525_v46  ;;  %v2590_v61 = vpop.f32.mrf.mxu1  ;;  %v1893_v14 = vpop.permute.xlu1 %1892 }
 0x1a7   : > { %v1989_v48 = vmax.f32 %v1973_v4, 0.0  ;;  %v2591_v51 = vadd.f32 %v2590_v61, %v2589_v13  ;;  %v2528_v3 = vpop.f32.mrf.mxu0  ;;  %v1462_v6 = vadd.f32 %v2472_v24, %v2408_v23  ;;  %v3788_v4 = vld [vmem:[#allocation21_spill] sm:$0xff] }
 0x1a8   : > { %v1974_v12 = vadd.f32 %v3523_v0, %v1954_v35  ;;  %v1935_v15 = vmul.f32 %v1885_v50, %v1855_v26  ;;  %v1836_v18 = vmul.f32 %v3435_v1, %v1640_v37  ;;  %v1548_v2 = vadd.f32 %v2527_v28, %v1451_v53  ;;  %v2592_v7 = vpop.f32.mrf.mxu1  ;;  %v3790_v35 = vld [vmem:[#allocation22_spill] sm:$0xff]  ;;  %v2008_v26 = vld [vmem:[%s3185_s12 + $0x28] sm:$0xff]  ;;  %v3791_v28 = vld [vmem:[#allocation27_spill] sm:$0xff] }
 0x1a9   : > { %v2021_v49 = vadd.f32 %v2005_v36, %v1989_v48  ;;  %v2529_v21 = vpop.f32.mrf.mxu0  ;;  %v2411_v34 = vadd.f32 %v3788_v4, %v3787_v17  ;;  %v3789_v36 = vld [vmem:[#allocation20_spill] sm:$0xff]  ;;  %v2010_v17 = vld [vmem:[%s3185_s12 + $0x38] sm:$0xff] }
 0x1aa   : > { %v1990_v38 = vmax.f32 %v1974_v12, 0.0  ;;  %v1955_v52 = vmul.f32 %v3520_v27, %v1935_v15  ;;  %v1856_v54 = vadd.f32 %v3507_v63, %v1836_v18  ;;  %v1645_v55 = vadd.f32 %v2591_v51, %v1548_v2  ;;  %v2593_v56 = vpop.f32.mrf.mxu1 }
 0x1ab   : > { %2037 = vst [vmem:[%s3550_s17 + $0x10] sm:$0xff] %v2021_v49  ;;  %v2530_v25 = vadd.f32 %v2529_v21, %v2528_v3  ;;  %v2531_v1 = vpop.f32.mrf.mxu0  ;;  %v2594_v20 = vadd.f32 %v2593_v56, %v2592_v7  ;;  %v2475_v37 = vadd.f32 %v3790_v35, %v3789_v36  ;;  %v1897_v49 = vpop.permute.xlu0 %1896  ;;  %v3794_v56 = vld [vmem:[#allocation25_spill] sm:$0xff] }
 0x1ac   : > { %v2022_v30 = vadd.f32 %v2006_v45, %v1990_v38  ;;  %v1975_v32 = vadd.f32 %v3523_v0, %v1955_v52  ;;  %v1936_v31 = vmul.f32 %v1889_v41, %v1856_v54  ;;  %v1837_v33 = vmul.f32 %v3443_v5, %v1645_v55  ;;  %v2595_v22 = vpop.f32.mrf.mxu1  ;;  %v3792_v45 = vld [vmem:[#allocation31_spill] sm:$0xff]  ;;  %v3796_v41 = vld [vmem:[#allocation26_spill] sm:$0xff] }
 0x1ad   : > { %v1551_v57 = vadd.f32 %v2530_v25, %v1454_v40  ;;  %v2532_v42 = vpop.f32.mrf.mxu0  ;;  %v1467_v54 = vadd.f32 %v2475_v37, %v2411_v34  ;;  %v3793_v55 = vld [vmem:[#allocation23_spill] sm:$0xff] }
 0x1ae   : > { %2038 = vst [vmem:[%s3550_s17 + $0x18] sm:$0xff] %v2022_v30  ;;  %v1991_v44 = vmax.f32 %v1975_v32, 0.0  ;;  %v1956_v43 = vmul.f32 %v3520_v27, %v1936_v31  ;;  %v1857_v46 = vadd.f32 %v3507_v63, %v1837_v33  ;;  %v2533_v10 = vadd.f32 %v2532_v42, %v2531_v1  ;;  %v2596_v5 = vpop.f32.mrf.mxu1  ;;  %v2009_v1 = vld [vmem:[%s3185_s12 + $0x30] sm:$0xff] }
 0x1af   : > { %v1648_v9 = vadd.f32 %v2594_v20, %v1551_v57  ;;  %v2597_v58 = vadd.f32 %v2596_v5, %v2595_v22  ;;  %v2534_v60 = vpop.f32.mrf.mxu0  ;;  %v2414_v40 = vadd.f32 %v3794_v56, %v3793_v55  ;;  %v1901_v57 = vpop.permute.xlu1 %1900 }
 0x1b0   : > { %v2023_v13 = vadd.f32 %v2007_v8, %v1991_v44  ;;  %v1976_v59 = vadd.f32 %v3523_v0, %v1956_v43  ;;  %v1937_v62 = vmul.f32 %v1893_v14, %v1857_v46  ;;  %v1556_v16 = vadd.f32 %v2533_v10, %v1459_v39  ;;  %v2598_v53 = vpop.f32.mrf.mxu1  ;;  %v3795_v39 = vld [vmem:[#allocation24_spill] sm:$0xff]  ;;  %v3797_v46 = vld [vmem:[#allocation35_spill] sm:$0xff] }
 0x1b1   : > { %v1838_v61 = vmul.f32 %v3791_v28, %v1648_v9  ;;  %v2535_v29 = vpop.f32.mrf.mxu0  ;;  %v2478_v25 = vadd.f32 %v3796_v41, %v3795_v39  ;;  %v3803_v28 = vld [vmem:[#allocation36_spill] sm:$0xff] }
 0x1b2   : > { %2039 = vst [vmem:[%s3550_s17 + $0x20] sm:$0xff] %v2023_v13  ;;  %v1992_v47 = vmax.f32 %v1976_v59, 0.0  ;;  %v1957_v48 = vmul.f32 %v3520_v27, %v1937_v62  ;;  %v1653_v50 = vadd.f32 %v2597_v58, %v1556_v16  ;;  %v2536_v51 = vadd.f32 %v2535_v29, %v2534_v60  ;;  %v2599_v3 = vpop.f32.mrf.mxu1  ;;  %v3798_v58 = vld [vmem:[#allocation28_spill] sm:$0xff]  ;;  %v3799_v60 = vld [vmem:[#allocation30_spill] sm:$0xff]  ;;  %v3800_v59 = vld [vmem:[#allocation29_spill] sm:$0xff] }
 0x1b3   : > { %v1858_v12 = vadd.f32 %v3507_v63, %v1838_v61  ;;  %v2600_v15 = vadd.f32 %v2599_v3, %v2598_v53  ;;  %v2537_v18 = vpop.f32.mrf.mxu0  ;;  %v1470_v9 = vadd.f32 %v2478_v25, %v2414_v40  ;;  %v2417_v13 = vadd.f32 %v3799_v60, %v3798_v58  ;;  %v3801_v62 = vld [vmem:[#allocation32_spill] sm:$0xff]  ;;  %v3804_v29 = vld [vmem:[#allocation34_spill] sm:$0xff] }
 0x1b4   : > { %v2024_v2 = vadd.f32 %v2008_v26, %v1992_v47  ;;  %v1977_v7 = vadd.f32 %v3523_v0, %v1957_v48  ;;  %v1839_v21 = vmul.f32 %v3792_v45, %v1653_v50  ;;  %v1559_v38 = vadd.f32 %v2536_v51, %v1462_v6  ;;  %v2601_v52 = vpop.f32.mrf.mxu1  ;;  %v3802_v26 = vld [vmem:[#allocation33_spill] sm:$0xff]  ;;  %v1905_v51 = vpop.permute.xlu0 %1904 }
 0x1b5   : > { %v1938_v30 = vmul.f32 %v1897_v49, %v1858_v12  ;;  %v2538_v32 = vpop.f32.mrf.mxu0  ;;  %v2481_v16 = vadd.f32 %v3801_v62, %v3800_v59  ;;  %v2420_v61 = vadd.f32 %v3803_v28, %v3802_v26  ;;  %v3805_v47 = vld [vmem:[#allocation37_spill] sm:$0xff]  ;;  %v3812_v28 = vld [vmem:[#allocation44_spill] sm:$0xff] }
 0x1b6   : > { %2040 = vst [vmem:[%s3550_s17 + $0x28] sm:$0xff] %v2024_v2  ;;  %v1993_v31 = vmax.f32 %v1977_v7, 0.0  ;;  %v1859_v33 = vadd.f32 %v3507_v63, %v1839_v21  ;;  %v1656_v22 = vadd.f32 %v2600_v15, %v1559_v38  ;;  %v2539_v23 = vadd.f32 %v2538_v32, %v2537_v18  ;;  %v2602_v24 = vpop.f32.mrf.mxu1  ;;  %v3806_v2 = vld [vmem:[#allocation39_spill] sm:$0xff] }
 0x1b7   : > { %v1958_v8 = vmul.f32 %v3520_v27, %v1938_v30  ;;  %v2603_v20 = vadd.f32 %v2602_v24, %v2601_v52  ;;  %v2540_v42 = vpop.f32.mrf.mxu0  ;;  %v2484_v48 = vadd.f32 %v3805_v47, %v3804_v29  ;;  %v2011_v38 = vld [vmem:[%s3185_s12 + $0x40] sm:$0xff]  ;;  %v1475_v41 = vadd.f32 %v2481_v16, %v2417_v13  ;;  %v3814_v47 = vld [vmem:[#allocation45_spill] sm:$0xff] }
 0x1b8   : > { %v2025_v44 = vadd.f32 %v2009_v1, %v1993_v31  ;;  %v1939_v43 = vmul.f32 %v1901_v57, %v1859_v33  ;;  %v1840_v10 = vmul.f32 %v3797_v46, %v1656_v22  ;;  %v1564_v5 = vadd.f32 %v2539_v23, %v1467_v54  ;;  %v2604_v14 = vpop.f32.mrf.mxu1  ;;  %v1909_v1 = vpop.permute.xlu1 %1908  ;;  %v3807_v23 = vld [vmem:[#allocation43_spill] sm:$0xff]  ;;  %v3808_v57 = vld [vmem:[#allocation38_spill] sm:$0xff] }
 0x1b9   : > { %v1978_v53 = vadd.f32 %v3523_v0, %v1958_v8  ;;  %v2541_v6 = vpop.f32.mrf.mxu0  ;;  %v1478_v25 = vadd.f32 %v2484_v48, %v2420_v61  ;;  %v1913_v16 = vpop.permute.xlu0 %1912  ;;  %v3813_v61 = vld [vmem:[#allocation46_spill] sm:$0xff]  ;;  %v3815_v48 = vld [vmem:[#allocation48_spill] sm:$0xff] }
 0x1ba   : > { %2041 = vst [vmem:[%s3550_s17 + $0x30] sm:$0xff] %v2025_v44  ;;  %v1959_v4 = vmul.f32 %v3520_v27, %v1939_v43  ;;  %v1860_v34 = vadd.f32 %v3507_v63, %v1840_v10  ;;  %v1661_v36 = vadd.f32 %v2603_v20, %v1564_v5  ;;  %v2542_v35 = vadd.f32 %v2541_v6, %v2540_v42  ;;  %v2605_v37 = vpop.f32.mrf.mxu1  ;;  %v3809_v20 = vld [vmem:[#allocation41_spill] sm:$0xff]  ;;  %v3810_v44 = vld [vmem:[#allocation40_spill] sm:$0xff]  ;;  %v3811_v43 = vld [vmem:[#allocation42_spill] sm:$0xff] }
 0x1bb   : > { %v1994_v50 = vmax.f32 %v1978_v53, 0.0  ;;  %v2606_v3 = vadd.f32 %v2605_v37, %v2604_v14  ;;  %v2543_v12 = vpop.f32.mrf.mxu0  ;;  %v2423_v42 = vadd.f32 %v3809_v20, %v3808_v57  ;;  %v2487_v46 = vadd.f32 %v3811_v43, %v3810_v44  ;;  %v2012_v10 = vld [vmem:[%s3185_s12 + $0x48] sm:$0xff] }
 0x1bc   : > { %v1979_v15 = vadd.f32 %v3523_v0, %v1959_v4  ;;  %v1940_v18 = vmul.f32 %v1905_v51, %v1860_v34  ;;  %v1841_v7 = vmul.f32 %v3806_v2, %v1661_v36  ;;  %v1567_v49 = vadd.f32 %v2542_v35, %v1470_v9  ;;  %v2607_v45 = vpop.f32.mrf.mxu1  ;;  %v2013_v51 = vld [vmem:[%s3185_s12 + $0x50] sm:$0xff] }
 0x1bd   : > { %v2026_v21 = vadd.f32 %v2010_v17, %v1994_v50  ;;  %v2544_v52 = vpop.f32.mrf.mxu0  ;;  %v1483_v26 = vadd.f32 %v2487_v46, %v2423_v42  ;;  %v2426_v29 = vadd.f32 %v3813_v61, %v3812_v28  ;;  %v2490_v50 = vadd.f32 %v3815_v48, %v3814_v47  ;;  %v1921_v57 = vpop.permute.xlu0 %1920 }
 0x1be   : > { %v1995_v54 = vmax.f32 %v1979_v15, 0.0  ;;  %v1960_v55 = vmul.f32 %v3520_v27, %v1940_v18  ;;  %v1861_v56 = vadd.f32 %v3507_v63, %v1841_v7  ;;  %v1664_v40 = vadd.f32 %v2606_v3, %v1567_v49  ;;  %v2608_v39 = vpop.f32.mrf.mxu1  ;;  %v3816_v3 = vld [vmem:[#allocation47_spill] sm:$0xff] }
 0x1bf   : > { %2042 = vst [vmem:[%s3550_s17 + $0x38] sm:$0xff] %v2026_v21  ;;  %v2545_v30 = vadd.f32 %v2544_v52, %v2543_v12  ;;  %v2546_v32 = vpop.f32.mrf.mxu0  ;;  %v2609_v14 = vadd.f32 %v2608_v39, %v2607_v45 }
 0x1c0   : > { %v2027_v31 = vadd.f32 %v2011_v38, %v1995_v54  ;;  %v1980_v33 = vadd.f32 %v3523_v0, %v1960_v55  ;;  %v1941_v22 = vmul.f32 %v1909_v1, %v1861_v56  ;;  %v1842_v24 = vmul.f32 %v3807_v23, %v1664_v40  ;;  %v2610_v8 = vpop.f32.mrf.mxu1  ;;  %v1917_v54 = vpop.permute.xlu1 %1916  ;;  %v3817_v40 = vld [vmem:[#allocation49_spill] sm:$0xff] }
 0x1c1   : > { %v1572_v5 = vadd.f32 %v2545_v30, %v1475_v41  ;;  %v2547_v9 = vpop.f32.mrf.mxu0  ;;  %v1486_v1 = vadd.f32 %v2490_v50, %v2426_v29  ;;  %v2014_v30 = vld [vmem:[%s3185_s12 + $0x58] sm:$0xff] }
 0x1c2   : > { %2043 = vst [vmem:[%s3550_s17 + $0x40] sm:$0xff] %v2027_v31  ;;  %v1996_v58 = vmax.f32 %v1980_v33, 0.0  ;;  %v1961_v60 = vmul.f32 %v3520_v27, %v1941_v22  ;;  %v1862_v13 = vadd.f32 %v3507_v63, %v1842_v24  ;;  %v2548_v59 = vadd.f32 %v2547_v9, %v2546_v32  ;;  %v2611_v62 = vpop.f32.mrf.mxu1 }
 0x1c3   : > { %v1669_v53 = vadd.f32 %v2609_v14, %v1572_v5  ;;  %v2612_v6 = vadd.f32 %v2611_v62, %v2610_v8  ;;  %v2549_v17 = vpop.f32.mrf.mxu0  ;;  %v2015_v14 = vld [vmem:[%s3185_s12 + $0x60] sm:$0xff] }
 0x1c4   : > { %v2028_v4 = vadd.f32 %v2012_v10, %v1996_v58  ;;  %v1981_v34 = vadd.f32 %v3523_v0, %v1961_v60  ;;  %v1942_v36 = vmul.f32 %v1913_v16, %v1862_v13  ;;  %v1575_v35 = vadd.f32 %v2548_v59, %v1478_v25  ;;  %v2613_v37 = vpop.f32.mrf.mxu1  ;;  %v1925_v13 = vpop.permute.xlu1 %1924 }
 0x1c5   : > { %v1843_v12 = vmul.f32 %v3816_v3, %v1669_v53  ;;  %v2550_v15 = vpop.f32.mrf.mxu0 }
 0x1c6   : > { %2044 = vst [vmem:[%s3550_s17 + $0x48] sm:$0xff] %v2028_v4  ;;  %v1997_v18 = vmax.f32 %v1981_v34, 0.0  ;;  %v1962_v2 = vmul.f32 %v3520_v27, %v1942_v36  ;;  %v1672_v7 = vadd.f32 %v2612_v6, %v1575_v35  ;;  %v2551_v49 = vadd.f32 %v2550_v15, %v2549_v17  ;;  %v2614_v45 = vpop.f32.mrf.mxu1  ;;  %v2016_v6 = vld [vmem:[%s3185_s12 + $0x68] sm:$0xff]  ;;  %v1929_v36 = vpop.permute.xlu0 %1928 }
 0x1c7   : > { %v1863_v21 = vadd.f32 %v3507_v63, %v1843_v12  ;;  %v2615_v38 = vadd.f32 %v2614_v45, %v2613_v37  ;;  %v2552_v52 = vpop.f32.mrf.mxu0 }
 0x1c8   : > { %v2029_v55 = vadd.f32 %v2013_v51, %v1997_v18  ;;  %v1982_v56 = vadd.f32 %v3523_v0, %v1962_v2  ;;  %v1844_v39 = vmul.f32 %v3817_v40, %v1672_v7  ;;  %v1580_v41 = vadd.f32 %v2551_v49, %v1483_v26  ;;  %v2616_v25 = vpop.f32.mrf.mxu1 }
 0x1c9   : > { %v1943_v32 = vmul.f32 %v1917_v54, %v1863_v21  ;;  %v2553_v31 = vpop.f32.mrf.mxu0 }
 0x1ca   : > { %2045 = vst [vmem:[%s3550_s17 + $0x50] sm:$0xff] %v2029_v55  ;;  %v1998_v33 = vmax.f32 %v1982_v56, 0.0  ;;  %v1864_v22 = vadd.f32 %v3507_v63, %v1844_v39  ;;  %v1677_v23 = vadd.f32 %v2615_v38, %v1580_v41  ;;  %v2554_v24 = vadd.f32 %v2553_v31, %v2552_v52  ;;  %v2617_v8 = vpop.f32.mrf.mxu1 }
 0x1cb   : > { %v1963_v20 = vmul.f32 %v3520_v27, %v1943_v32  ;;  %v2618_v42 = vadd.f32 %v2617_v8, %v2616_v25 }
 0x1cc   : > { %v2030_v44 = vadd.f32 %v2014_v30, %v1998_v33  ;;  %v1944_v43 = vmul.f32 %v1921_v57, %v1864_v22  ;;  %v1845_v46 = vmul.f32 %v3505_v19, %v1677_v23  ;;  %v1583_v10 = vadd.f32 %v2554_v24, %v1486_v1 }
 0x1cd   : > { %v1983_v5 = vadd.f32 %v3523_v0, %v1963_v20 }
 0x1ce   : > { %2046 = vst [vmem:[%s3550_s17 + $0x58] sm:$0xff] %v2030_v44  ;;  %v1964_v9 = vmul.f32 %v3520_v27, %v1944_v43  ;;  %v1865_v58 = vadd.f32 %v3507_v63, %v1845_v46  ;;  %v1680_v60 = vadd.f32 %v2618_v42, %v1583_v10 }
 0x1cf   : > { %v1999_v59 = vmax.f32 %v1983_v5, 0.0 }
 0x1d0   : > { %v1984_v62 = vadd.f32 %v3523_v0, %v1964_v9  ;;  %v1945_v16 = vmul.f32 %v1925_v13, %v1865_v58  ;;  %v1846_v19 = vmul.f32 %v3513_v11, %v1680_v60  ;;  %v2017_v11 = vld [vmem:[%s3185_s12 + $0x70] sm:$0xff] }
 0x1d1   : > { %v2031_v53 = vadd.f32 %v2015_v14, %v1999_v59 }
 0x1d2   : > { %v2000_v17 = vmax.f32 %v1984_v62, 0.0  ;;  %v1965_v4 = vmul.f32 %v3520_v27, %v1945_v16  ;;  %v1866_v34 = vadd.f32 %v3507_v63, %v1846_v19  ;;  %v2018_v63 = vld [vmem:[%s3185_s12 + $0x78] sm:$0xff] }
 0x1d3   : > { %2047 = vst [vmem:[%s3550_s17 + $0x60] sm:$0xff] %v2031_v53 }
 0x1d4   : > { %v2032_v35 = vadd.f32 %v2016_v6, %v2000_v17  ;;  %v1985_v37 = vadd.f32 %v3523_v0, %v1965_v4  ;;  %v1946_v26 = vmul.f32 %v1929_v36, %v1866_v34 }
 0x1d6   : > { %2048 = vst [vmem:[%s3550_s17 + $0x68] sm:$0xff] %v2032_v35  ;;  %v2001_v28 = vmax.f32 %v1985_v37, 0.0  ;;  %v1966_v61 = vmul.f32 %v3520_v27, %v1946_v26 }
 0x1d8   : > { %v2033_v29 = vadd.f32 %v2017_v11, %v2001_v28  ;;  %v1986_v47 = vadd.f32 %v3523_v0, %v1966_v61 }
 0x1da   : > { %2049 = vst [vmem:[%s3550_s17 + $0x70] sm:$0xff] %v2033_v29  ;;  %v2002_v48 = vmax.f32 %v1986_v47, 0.0 }
 0x1dc   : > { %v2034_v50 = vadd.f32 %v2018_v63, %v2002_v48 }
 0x1de   : > { %2050 = vst [vmem:[%s3550_s17 + $0x78] sm:$0xff] %v2034_v50 }
 0x1df   : > { %2906 = shalt.err (!%p2903_p3)
}
 0x1e0   : > { %s2907_s20 = scalar_lea.hbm %s3675_s10, 2048  ;;  %s2911_s7 = scalar_lea.hbm %s3730_s5, 16384 }
 0x1e1   : > { %p2908_p1 = scmp.ne.s32.totalorder %s3675_s10, %s2907_s20  ;;  %p2912_p0 = scmp.lt.s32.totalorder %s3675_s10, %s3730_s5 }
 0x1e2   : > { %p2913_p7 = scmp.lt.s32.totalorder %s2911_s7, %s2907_s20 }
 0x1e3   : > { %p2909_p11 = pnand %p2908_p1, %p3818_p2 }
 0x1e4   : > { %p2914_p12 = por %p2913_p7, %p2912_p0 }
 0x1e5   : > { %p2910_p13 = pneg %p2909_p11 }
 0x1e7   : > { %p2915_p5 = pnand %p2914_p12, %p2910_p13 }
 0x1e9   : > { %2918 = shalt.err (!%p2915_p5)
}
 0x1ea   : > { %s2996_s29 = smov 128   ;;  %s2997_s11 = smov 8  }
 0x1eb   : > { %2631 = dma.vmem_to_hbm [thread:$0]  (%p3818_p2), %s3677_s28, 2048, %s3675_s10, %s2052_s1, %s2996_s29, %s2996_s29, %s2997_s11  }
 0x1ec PF: > { %p2656_p4 = scmp.ge.s32.totalorder %s2981_s23, 2  ;;  %s2080_s26 = sand.u32 1, %s2961_s18  }
 0x1ed   : > { %p3819_p10 = scmp.ne.s32.totalorder %s3745_s6, 0  ;;  %s2081_s16 = scalar_lea.sflag [#allocation5], %s2080_s26 }
 0x1ef   : > { %p2648_p6 = pnand %p2656_p4, %p3819_p10 }
 0x1f1   : > { %p2649_p8 = pneg %p2648_p6 }
 0x1f3   : > { %2956 = dma.done.wait (%p2649_p8), %s2081_s16, 2048  }
 0x1f4   : > { %2958 = vsyncadd (%p2649_p8), %s2081_s16, 4294965248  ;;  %s25_s23 = sadd.s32 1, %s2981_s23   ;;  %s3820_s17 = sld [smem:[#allocation16_spill]] }
 0x1f5   : > { %p22_p9 = scmp.ge.s32.totalorder %s25_s23, 10   ;;  %s3821_s20 = sld [smem:[#allocation18_spill]] }
 0x1f6   : > { %s3822_s30 = sld [smem:[#allocation17_spill]]  ;;  %s3823_s18 = smov %s2965_s19 }
 0x1f7   : > { %s3825_s21 = smov %s2977_s22 }
 0x1f8   :  { %24 = sbr.rel (!%p22_p9) target bundleno = 13 (0xd), region = 118 }
 0x1fa   : > { %s3824_s19 = smov %s3820_s17 }
 0x1fc   : > { %s3826_s22 = smov %s3822_s30 }
 0x1fd   :  { %2086 = vsyncpa [#allocation4], 1 }
 0x1fe   :  { %2088 = vsyncpa [#allocation4 + $0x1], 1 }
 0x1ff   :  { %2089 = vsyncpa [#allocation7], 1 }
 0x200   :  { %2090 = vsyncpa [#allocation10], 1 }
 0x201   :  { %2092 = vsyncpa [#allocation10 + $0x1], 1 }
 0x202   :  { %2093 = vsyncpa [#allocation5], 1 }
 0x203   :  { %2095 = vsyncpa [#allocation5 + $0x1], 1 }

</bundles_post_ra>
